<compile_context>
chip_gen: v7x
topology: tpu7x:2x2x1
jax: 0.10.0
libtpu: 0.0.40
codegen_flags: <defaults>
</compile_context>

<pallas_src>
import functools

import jax
import jax.numpy as jnp
import numpy as np
from jax.experimental import pallas as pl
from jax.experimental.pallas import tpu as pltpu

LANE = 128
NEG_BIG = -1e30


def _round_up(x, m):
    return (x + m - 1) // m * m


# ----------------------------------------------------------------------------
# The single fused kernel
# ----------------------------------------------------------------------------
def _m5_kernel(p1_ref, w1_ref, s1_ref,
               sel2_ref, w2_ref, s2_ref,
               sel3_ref, w3_ref, s3_ref,
               sel4_ref, w4_ref, s4_ref,
               savg_ref, wfc_ref, bfc_ref,
               o_ref):
    f32 = jnp.float32
    bf16 = jnp.bfloat16

    # ---- layer 1: conv1 via phase-major im2col matmul + BN shift + ReLU ----
    # p1 rows are ordered [phase j][batch b][pool group g]; one matmul covers
    # all 4 MaxPool phases, and the pool is an elementwise max over the 4
    # contiguous, tile-aligned phase blocks.
    y1 = jnp.dot(p1_ref[...], w1_ref[...], preferred_element_type=f32)
    z1 = jnp.maximum(y1 + s1_ref[...], 0.0)
    r1 = z1.shape[0] // 4
    h = jnp.maximum(jnp.maximum(z1[:r1], z1[r1:2 * r1]),
                    jnp.maximum(z1[2 * r1:3 * r1], z1[3 * r1:]))

    # ---- layers 2-4: k=3 conv + BN + ReLU + MaxPool(4), all on the MXU ----
    def conv_block(h, sel_ref, w_ref, shift_ref):
        # Gather input rows h[b, 4g + m], m = 0..5 (the 6 shifted/strided row
        # sets a k=3 conv + pool(4) needs) with one 0/1 selection matmul.
        a = jnp.dot(sel_ref[...], h.astype(bf16),
                    preferred_element_type=f32).astype(bf16)
        rp = a.shape[0] // 6
        # Phase-major conv output: phase block j (of 4) uses gathered blocks
        # m = j, j+1, j+2  ->  three overlapping contiguous slices of `a`,
        # i.e. three long MXU pushes for all phases at once.
        y = (jnp.dot(a[:4 * rp], w_ref[0], preferred_element_type=f32)
             + jnp.dot(a[rp:5 * rp], w_ref[1], preferred_element_type=f32)
             + jnp.dot(a[2 * rp:], w_ref[2], preferred_element_type=f32))
        z = jnp.maximum(y + shift_ref[...], 0.0)            # folded BN + ReLU
        return jnp.maximum(jnp.maximum(z[:rp], z[rp:2 * rp]),   # MaxPool1d(4)
                           jnp.maximum(z[2 * rp:3 * rp], z[3 * rp:]))

    h = conv_block(h, sel2_ref, w2_ref, s2_ref)
    h = conv_block(h, sel3_ref, w3_ref, s3_ref)
    h = conv_block(h, sel4_ref, w4_ref, s4_ref)

    # ---- head: global average pool (selection matmul) + Linear + log_softmax
    feat = jnp.dot(savg_ref[...], h.astype(bf16), preferred_element_type=f32)
    # Padded logit lanes are masked via the -1e30 padding baked into the bias.
    logits = jnp.dot(feat.astype(bf16), wfc_ref[...],
                     preferred_element_type=f32) + bfc_ref[...]
    mx = jnp.max(logits, axis=-1, keepdims=True)
    zc = logits - mx
    lse = jnp.log(jnp.sum(jnp.exp(zc), axis=-1, keepdims=True))
    o_ref[...] = zc - lse


# ----------------------------------------------------------------------------
# One-time preparation (outside jit): BN folding, padding, selection matrices
# ----------------------------------------------------------------------------
def _fold_conv_bn(w, b, gamma, beta, mean, var, eps=1e-5):
    """Fold eval-mode BatchNorm (+ conv bias) into per-tap weights and a shift.
    w: [cout, cin, k] (PyTorch layout) -> (w_taps [k, cin, cout] * scale, shift)."""
    scale = gamma / jnp.sqrt(var + eps)
    shift = beta + scale * (b - mean)
    wt = jnp.transpose(w, (2, 1, 0)) * scale
    return wt, shift


def _pad_shift(shift):
    return jnp.pad(shift, (0, LANE - shift.shape[0])).reshape(1, LANE).astype(jnp.float32)


def _pad_taps(wt):
    k, cin, cout = wt.shape
    wt = jnp.pad(wt, ((0, 0), (0, LANE - cin), (0, LANE - cout)))
    return wt.astype(jnp.bfloat16)


def _make_sel(batch, gp_in, gp_out, g_out):
    """0/1 matrix gathering rows h[b, 4g + m] (m = 0..5, phase-major, g < g_out)."""
    s = np.zeros((6 * batch * gp_out, batch * gp_in), np.float32)
    for m in range(6):
        for b in range(batch):
            for g in range(g_out):
                s[(m * batch + b) * gp_out + g, b * gp_in + 4 * g + m] = 1.0
    return jnp.asarray(s, jnp.bfloat16)


def _make_avg(batch, b_pad, gp_in, g_in):
    """Global average pool over the g_in valid positions of each batch item."""
    s = np.zeros((b_pad, batch * gp_in), np.float32)
    for b in range(batch):
        s[b, b * gp_in:b * gp_in + g_in] = 1.0 / g_in
    return jnp.asarray(s, jnp.bfloat16)


def prepare_m5(params, batch, length, stride=16, pool=4, eps=1e-5):
    """Fold BN into conv weights, pad everything to 128 lanes, and build the
    constant selection matrices used by the fused kernel."""
    k1 = params["conv1"][0].shape[-1]
    # per-layer pooled lengths (PyTorch Conv1d(k=3) + MaxPool1d(4) semantics)
    g = (length - k1) // stride + 1
    gs, gps = [], []
    for n in range(4):
        if n > 0:
            g = g - 2
        g = g // pool
        gs.append(g)
        gps.append(_round_up(max(g, 1), 8))
    g1, g2, g3, g4 = gs
    gp1, gp2, gp3, gp4 = gps
    assert g4 >= 1, "input too short for the M5 architecture"
    b_pad = _round_up(batch, 8)

    wt1, sh1 = _fold_conv_bn(*params["conv1"], *params["bn1"], eps)
    wt2, sh2 = _fold_conv_bn(*params["conv2"], *params["bn2"], eps)
    wt3, sh3 = _fold_conv_bn(*params["conv3"], *params["bn3"], eps)
    wt4, sh4 = _fold_conv_bn(*params["conv4"], *params["bn4"], eps)
    assert max(wt2.shape[2], wt3.shape[2], wt4.shape[2]) <= LANE

    k1dim = wt1.shape[0] * wt1.shape[1]                    # k * cin
    w1 = wt1.reshape(k1dim, -1)
    w1 = jnp.pad(w1, ((0, _round_up(k1dim, LANE) - k1dim),
                      (0, LANE - w1.shape[1]))).astype(jnp.bfloat16)

    fc_w, fc_b = params["fc_w"], params["fc_b"]
    n_out, n_feat = fc_w.shape
    wfc = jnp.pad(jnp.transpose(fc_w),
                  ((0, LANE - n_feat), (0, LANE - n_out))).astype(jnp.bfloat16)
    # -1e30 padding doubles as the log_softmax mask for the padded lanes.
    bfc = jnp.full((1, LANE), NEG_BIG, jnp.float32).at[0, :n_out].set(fc_b)

    return dict(
        w1=w1, s1=_pad_shift(sh1),
        sel2=_make_sel(batch, gp1, gp2, g2), w2=_pad_taps(wt2), s2=_pad_shift(sh2),
        sel3=_make_sel(batch, gp2, gp3, g3), w3=_pad_taps(wt3), s3=_pad_shift(sh3),
        sel4=_make_sel(batch, gp3, gp4, g4), w4=_pad_taps(wt4), s4=_pad_shift(sh4),
        savg=_make_avg(batch, b_pad, gp4, g4),
        wfc=wfc, bfc=bfc,
    )


# ----------------------------------------------------------------------------
# Forward pass: build conv1 phase-major patches, then one fused pallas_call
# ----------------------------------------------------------------------------
@functools.partial(jax.jit, static_argnames=("n_output", "kernel_size", "stride"))
def m5_forward(x_ncl, prepared, n_output=35, kernel_size=80, stride=16):
    pool = 4
    bsz, cin, length = x_ncl.shape
    lout = (length - kernel_size) // stride + 1            # conv1 output length
    g1 = lout // pool
    gp1 = _round_up(g1, 8)
    kdim = kernel_size * cin
    kpad = _round_up(kdim, LANE)

    # conv1 im2col in phase-major order: row (j, b, g) <-> conv position 4g+j.
    x = jnp.transpose(x_ncl, (0, 2, 1))                    # NCL -> [B, L, Cin]
    if kernel_size % stride == 0 and length % stride == 0:
        # frame trick: unit-stride slices + concat, no gather
        nf, kf = length // stride, kernel_size // stride
        frames = x.reshape(bsz, nf, stride * cin)
        patches = jnp.concatenate(
            [frames[:, t:t + lout, :] for t in range(kf)], axis=-1)
    else:  # generic fallback (not used for the M5 config)
        patches = jnp.concatenate(
            [x[:, t:t + (lout - 1) * stride + 1:stride, :]
             for t in range(kernel_size)], axis=-1)
    patches = patches[:, :pool * g1, :]                    # positions kept by pool1
    patches = jnp.pad(patches, ((0, 0), (0, 0), (0, kpad - kdim)))
    patches = patches.reshape(bsz, g1, pool, kpad).transpose(2, 0, 1, 3)
    patches = jnp.pad(patches, ((0, 0), (0, 0), (0, gp1 - g1), (0, 0)))
    patches = patches.reshape(pool * bsz * gp1, kpad).astype(jnp.bfloat16)

    kin = [patches, prepared["w1"], prepared["s1"],
           prepared["sel2"], prepared["w2"], prepared["s2"],
           prepared["sel3"], prepared["w3"], prepared["s3"],
           prepared["sel4"], prepared["w4"], prepared["s4"],
           prepared["savg"], prepared["wfc"], prepared["bfc"]]

    def _full(a):
        return pl.BlockSpec(a.shape, lambda i, n=a.ndim: (0,) * n)

    b_pad = prepared["savg"].shape[0]
    out = pl.pallas_call(
        _m5_kernel,
        out_shape=jax.ShapeDtypeStruct((b_pad, LANE), jnp.float32),
        grid=(1,),
        in_specs=[_full(a) for a in kin],
        out_specs=pl.BlockSpec((b_pad, LANE), lambda i: (0, 0)),
        compiler_params=pltpu.CompilerParams(
            dimension_semantics=("arbitrary",)),
    )(*kin)

    return out[:bsz, :n_output][:, None, :]                # [B, 1, n_output]


# ----------------------------------------------------------------------------
# Deterministic synthetic parameters
# ----------------------------------------------------------------------------
def init_params(key, n_input=1, n_output=35, n_channel=32):
    ks = iter(jax.random.split(key, 32))

    def conv_p(cout, cin, ksz):
        w = 0.1 * jax.random.normal(next(ks), (cout, cin, ksz), jnp.float32)
        b = 0.1 * jax.random.normal(next(ks), (cout,), jnp.float32)
        return (w, b)

    def bn_p(c):
        gamma = 1.0 + 0.1 * jax.random.normal(next(ks), (c,), jnp.float32)
        beta = 0.1 * jax.random.normal(next(ks), (c,), jnp.float32)
        mean = 0.05 * jax.random.normal(next(ks), (c,), jnp.float32)
        var = 1.0 + 0.1 * jnp.abs(jax.random.normal(next(ks), (c,), jnp.float32))
        return (gamma, beta, mean, var)

    return {
        "conv1": conv_p(n_channel, n_input, 80),           "bn1": bn_p(n_channel),
        "conv2": conv_p(n_channel, n_channel, 3),          "bn2": bn_p(n_channel),
        "conv3": conv_p(2 * n_channel, n_channel, 3),      "bn3": bn_p(2 * n_channel),
        "conv4": conv_p(2 * n_channel, 2 * n_channel, 3),  "bn4": bn_p(2 * n_channel),
        "fc_w": 0.1 * jax.random.normal(next(ks), (n_output, 2 * n_channel), jnp.float32),
        "fc_b": 0.1 * jax.random.normal(next(ks), (n_output,), jnp.float32),
    }


if __name__ == "__main__":
    key = jax.random.PRNGKey(0)
    kx, kp = jax.random.split(key)

    B, L = 2, 8000                                      # 1-second 8 kHz waveform
    x = jax.random.normal(kx, (B, 1, L), jnp.float32)   # PyTorch NCL input layout
    params = init_params(kp)
    prepared = prepare_m5(params, batch=B, length=L)

    out = m5_forward(x, prepared, n_output=35, kernel_size=80, stride=16)
    jax.block_until_ready(out)
    assert out.shape == (B, 1, 35), out.shape
    assert bool(jnp.all(jnp.isfinite(out))), "non-finite output"
    print("KERNEL_OK")
</pallas_src>

<mosaic_0001>
module attributes {stable_mosaic.version = 11 : i64} {
  func.func @_m5_kernel(%arg0: i32, %arg1: memref<1024x128xbf16, #tpu.memory_space<vmem>>, %arg2: memref<128x128xbf16, #tpu.memory_space<vmem>>, %arg3: memref<1x128xf32, #tpu.memory_space<vmem>>, %arg4: memref<384x256xbf16, #tpu.memory_space<vmem>>, %arg5: memref<3x128x128xbf16, #tpu.memory_space<vmem>>, %arg6: memref<1x128xf32, #tpu.memory_space<vmem>>, %arg7: memref<96x64xbf16, #tpu.memory_space<vmem>>, %arg8: memref<3x128x128xbf16, #tpu.memory_space<vmem>>, %arg9: memref<1x128xf32, #tpu.memory_space<vmem>>, %arg10: memref<96x16xbf16, #tpu.memory_space<vmem>>, %arg11: memref<3x128x128xbf16, #tpu.memory_space<vmem>>, %arg12: memref<1x128xf32, #tpu.memory_space<vmem>>, %arg13: memref<8x16xbf16, #tpu.memory_space<vmem>>, %arg14: memref<128x128xbf16, #tpu.memory_space<vmem>>, %arg15: memref<1x128xf32, #tpu.memory_space<vmem>>, %arg16: memref<8x128xf32, #tpu.memory_space<vmem>>) attributes {dimension_semantics = [#tpu.dimension_semantics<arbitrary>], iteration_bounds = array<i64: 1>, scalar_prefetch = 0 : i64, scratch_operands = 0 : i64, tpu.core_type = #tpu.core_type<tc>, window_params = [{pipeline_mode = #tpu.pipeline_mode<synchronous>, transform_indices = @transform_0, window_bounds = array<i64: 1024, 128>}, {pipeline_mode = #tpu.pipeline_mode<synchronous>, transform_indices = @transform_1, window_bounds = array<i64: 128, 128>}, {pipeline_mode = #tpu.pipeline_mode<synchronous>, transform_indices = @transform_2, window_bounds = array<i64: 1, 128>}, {pipeline_mode = #tpu.pipeline_mode<synchronous>, transform_indices = @transform_3, window_bounds = array<i64: 384, 256>}, {pipeline_mode = #tpu.pipeline_mode<synchronous>, transform_indices = @transform_4, window_bounds = array<i64: 3, 128, 128>}, {pipeline_mode = #tpu.pipeline_mode<synchronous>, transform_indices = @transform_5, window_bounds = array<i64: 1, 128>}, {pipeline_mode = #tpu.pipeline_mode<synchronous>, transform_indices = @transform_6, window_bounds = array<i64: 96, 64>}, {pipeline_mode = #tpu.pipeline_mode<synchronous>, transform_indices = @transform_7, window_bounds = array<i64: 3, 128, 128>}, {pipeline_mode = #tpu.pipeline_mode<synchronous>, transform_indices = @transform_8, window_bounds = array<i64: 1, 128>}, {pipeline_mode = #tpu.pipeline_mode<synchronous>, transform_indices = @transform_9, window_bounds = array<i64: 96, 16>}, {pipeline_mode = #tpu.pipeline_mode<synchronous>, transform_indices = @transform_10, window_bounds = array<i64: 3, 128, 128>}, {pipeline_mode = #tpu.pipeline_mode<synchronous>, transform_indices = @transform_11, window_bounds = array<i64: 1, 128>}, {pipeline_mode = #tpu.pipeline_mode<synchronous>, transform_indices = @transform_12, window_bounds = array<i64: 8, 16>}, {pipeline_mode = #tpu.pipeline_mode<synchronous>, transform_indices = @transform_13, window_bounds = array<i64: 128, 128>}, {pipeline_mode = #tpu.pipeline_mode<synchronous>, transform_indices = @transform_14, window_bounds = array<i64: 1, 128>}, {pipeline_mode = #tpu.pipeline_mode<synchronous>, transform_indices = @transform_15, window_bounds = array<i64: 8, 128>}]} {
    %c0 = arith.constant 0 : index
    %c0_0 = arith.constant 0 : index
    %0 = vector.load %arg1[%c0, %c0_0] : memref<1024x128xbf16, #tpu.memory_space<vmem>>, vector<1024x128xbf16>
    %c0_1 = arith.constant 0 : index
    %c0_2 = arith.constant 0 : index
    %1 = vector.load %arg2[%c0_1, %c0_2] : memref<128x128xbf16, #tpu.memory_space<vmem>>, vector<128x128xbf16>
    %cst = arith.constant dense<0.000000e+00> : vector<1024x128xf32>
    %2 = tpu.matmul %0, %1, %cst {dimension_numbers = #tpu.dot_dimension_numbers<[1], [0], [0], [1], [0, 0, 1, 1], [], []>} : vector<1024x128xbf16>, vector<128x128xbf16>, vector<1024x128xf32> -> vector<1024x128xf32>
    %c0_3 = arith.constant 0 : index
    %c0_4 = arith.constant 0 : index
    %3 = vector.load %arg3[%c0_3, %c0_4] : memref<1x128xf32, #tpu.memory_space<vmem>>, vector<1x128xf32>
    %4 = vector.broadcast %3 : vector<1x128xf32> to vector<1024x128xf32>
    %5 = arith.addf %2, %4 : vector<1024x128xf32>
    %cst_5 = arith.constant 0.000000e+00 : f32
    %6 = vector.broadcast %cst_5 : f32 to vector<1024x128xf32>
    %7 = arith.maximumf %5, %6 : vector<1024x128xf32>
    %8 = vector.extract_strided_slice %7 {offsets = [0, 0], sizes = [256, 128], strides = [1, 1]} : vector<1024x128xf32> to vector<256x128xf32>
    %9 = vector.extract_strided_slice %7 {offsets = [256, 0], sizes = [256, 128], strides = [1, 1]} : vector<1024x128xf32> to vector<256x128xf32>
    %10 = arith.maximumf %8, %9 : vector<256x128xf32>
    %11 = vector.extract_strided_slice %7 {offsets = [512, 0], sizes = [256, 128], strides = [1, 1]} : vector<1024x128xf32> to vector<256x128xf32>
    %12 = vector.extract_strided_slice %7 {offsets = [768, 0], sizes = [256, 128], strides = [1, 1]} : vector<1024x128xf32> to vector<256x128xf32>
    %13 = arith.maximumf %11, %12 : vector<256x128xf32>
    %14 = arith.maximumf %10, %13 : vector<256x128xf32>
    %c0_6 = arith.constant 0 : index
    %c0_7 = arith.constant 0 : index
    %15 = vector.load %arg4[%c0_6, %c0_7] : memref<384x256xbf16, #tpu.memory_space<vmem>>, vector<384x256xbf16>
    %16 = arith.truncf %14 : vector<256x128xf32> to vector<256x128xbf16>
    %cst_8 = arith.constant dense<0.000000e+00> : vector<384x128xf32>
    %17 = tpu.matmul %15, %16, %cst_8 {dimension_numbers = #tpu.dot_dimension_numbers<[1], [0], [0], [1], [0, 0, 1, 1], [], []>} : vector<384x256xbf16>, vector<256x128xbf16>, vector<384x128xf32> -> vector<384x128xf32>
    %18 = arith.truncf %17 : vector<384x128xf32> to vector<384x128xbf16>
    %19 = vector.extract_strided_slice %18 {offsets = [0, 0], sizes = [256, 128], strides = [1, 1]} : vector<384x128xbf16> to vector<256x128xbf16>
    %c0_9 = arith.constant 0 : index
    %c0_10 = arith.constant 0 : index
    %c0_11 = arith.constant 0 : index
    %20 = vector.load %arg5[%c0_9, %c0_10, %c0_11] : memref<3x128x128xbf16, #tpu.memory_space<vmem>>, vector<1x128x128xbf16>
    %21 = vector.shape_cast %20 : vector<1x128x128xbf16> to vector<128x128xbf16>
    %cst_12 = arith.constant dense<0.000000e+00> : vector<256x128xf32>
    %22 = tpu.matmul %19, %21, %cst_12 {dimension_numbers = #tpu.dot_dimension_numbers<[1], [0], [0], [1], [0, 0, 1, 1], [], []>} : vector<256x128xbf16>, vector<128x128xbf16>, vector<256x128xf32> -> vector<256x128xf32>
    %23 = vector.extract_strided_slice %18 {offsets = [64, 0], sizes = [256, 128], strides = [1, 1]} : vector<384x128xbf16> to vector<256x128xbf16>
    %c1 = arith.constant 1 : index
    %c0_13 = arith.constant 0 : index
    %c0_14 = arith.constant 0 : index
    %24 = vector.load %arg5[%c1, %c0_13, %c0_14] : memref<3x128x128xbf16, #tpu.memory_space<vmem>>, vector<1x128x128xbf16>
    %25 = vector.shape_cast %24 : vector<1x128x128xbf16> to vector<128x128xbf16>
    %cst_15 = arith.constant dense<0.000000e+00> : vector<256x128xf32>
    %26 = tpu.matmul %23, %25, %cst_15 {dimension_numbers = #tpu.dot_dimension_numbers<[1], [0], [0], [1], [0, 0, 1, 1], [], []>} : vector<256x128xbf16>, vector<128x128xbf16>, vector<256x128xf32> -> vector<256x128xf32>
    %27 = arith.addf %22, %26 : vector<256x128xf32>
    %28 = vector.extract_strided_slice %18 {offsets = [128, 0], sizes = [256, 128], strides = [1, 1]} : vector<384x128xbf16> to vector<256x128xbf16>
    %c2 = arith.constant 2 : index
    %c0_16 = arith.constant 0 : index
    %c0_17 = arith.constant 0 : index
    %29 = vector.load %arg5[%c2, %c0_16, %c0_17] : memref<3x128x128xbf16, #tpu.memory_space<vmem>>, vector<1x128x128xbf16>
    %30 = vector.shape_cast %29 : vector<1x128x128xbf16> to vector<128x128xbf16>
    %cst_18 = arith.constant dense<0.000000e+00> : vector<256x128xf32>
    %31 = tpu.matmul %28, %30, %cst_18 {dimension_numbers = #tpu.dot_dimension_numbers<[1], [0], [0], [1], [0, 0, 1, 1], [], []>} : vector<256x128xbf16>, vector<128x128xbf16>, vector<256x128xf32> -> vector<256x128xf32>
    %32 = arith.addf %27, %31 : vector<256x128xf32>
    %c0_19 = arith.constant 0 : index
    %c0_20 = arith.constant 0 : index
    %33 = vector.load %arg6[%c0_19, %c0_20] : memref<1x128xf32, #tpu.memory_space<vmem>>, vector<1x128xf32>
    %34 = vector.broadcast %33 : vector<1x128xf32> to vector<256x128xf32>
    %35 = arith.addf %32, %34 : vector<256x128xf32>
    %cst_21 = arith.constant 0.000000e+00 : f32
    %36 = vector.broadcast %cst_21 : f32 to vector<256x128xf32>
    %37 = arith.maximumf %35, %36 : vector<256x128xf32>
    %38 = vector.extract_strided_slice %37 {offsets = [0, 0], sizes = [64, 128], strides = [1, 1]} : vector<256x128xf32> to vector<64x128xf32>
    %39 = vector.extract_strided_slice %37 {offsets = [64, 0], sizes = [64, 128], strides = [1, 1]} : vector<256x128xf32> to vector<64x128xf32>
    %40 = arith.maximumf %38, %39 : vector<64x128xf32>
    %41 = vector.extract_strided_slice %37 {offsets = [128, 0], sizes = [64, 128], strides = [1, 1]} : vector<256x128xf32> to vector<64x128xf32>
    %42 = vector.extract_strided_slice %37 {offsets = [192, 0], sizes = [64, 128], strides = [1, 1]} : vector<256x128xf32> to vector<64x128xf32>
    %43 = arith.maximumf %41, %42 : vector<64x128xf32>
    %44 = arith.maximumf %40, %43 : vector<64x128xf32>
    %c0_22 = arith.constant 0 : index
    %c0_23 = arith.constant 0 : index
    %45 = vector.load %arg7[%c0_22, %c0_23] : memref<96x64xbf16, #tpu.memory_space<vmem>>, vector<96x64xbf16>
    %46 = arith.truncf %44 : vector<64x128xf32> to vector<64x128xbf16>
    %cst_24 = arith.constant dense<0.000000e+00> : vector<96x128xf32>
    %47 = tpu.matmul %45, %46, %cst_24 {dimension_numbers = #tpu.dot_dimension_numbers<[1], [0], [0], [1], [0, 0, 1, 1], [], []>} : vector<96x64xbf16>, vector<64x128xbf16>, vector<96x128xf32> -> vector<96x128xf32>
    %48 = arith.truncf %47 : vector<96x128xf32> to vector<96x128xbf16>
    %49 = vector.extract_strided_slice %48 {offsets = [0, 0], sizes = [64, 128], strides = [1, 1]} : vector<96x128xbf16> to vector<64x128xbf16>
    %c0_25 = arith.constant 0 : index
    %c0_26 = arith.constant 0 : index
    %c0_27 = arith.constant 0 : index
    %50 = vector.load %arg8[%c0_25, %c0_26, %c0_27] : memref<3x128x128xbf16, #tpu.memory_space<vmem>>, vector<1x128x128xbf16>
    %51 = vector.shape_cast %50 : vector<1x128x128xbf16> to vector<128x128xbf16>
    %cst_28 = arith.constant dense<0.000000e+00> : vector<64x128xf32>
    %52 = tpu.matmul %49, %51, %cst_28 {dimension_numbers = #tpu.dot_dimension_numbers<[1], [0], [0], [1], [0, 0, 1, 1], [], []>} : vector<64x128xbf16>, vector<128x128xbf16>, vector<64x128xf32> -> vector<64x128xf32>
    %53 = vector.extract_strided_slice %48 {offsets = [16, 0], sizes = [64, 128], strides = [1, 1]} : vector<96x128xbf16> to vector<64x128xbf16>
    %c1_29 = arith.constant 1 : index
    %c0_30 = arith.constant 0 : index
    %c0_31 = arith.constant 0 : index
    %54 = vector.load %arg8[%c1_29, %c0_30, %c0_31] : memref<3x128x128xbf16, #tpu.memory_space<vmem>>, vector<1x128x128xbf16>
    %55 = vector.shape_cast %54 : vector<1x128x128xbf16> to vector<128x128xbf16>
    %cst_32 = arith.constant dense<0.000000e+00> : vector<64x128xf32>
    %56 = tpu.matmul %53, %55, %cst_32 {dimension_numbers = #tpu.dot_dimension_numbers<[1], [0], [0], [1], [0, 0, 1, 1], [], []>} : vector<64x128xbf16>, vector<128x128xbf16>, vector<64x128xf32> -> vector<64x128xf32>
    %57 = arith.addf %52, %56 : vector<64x128xf32>
    %58 = vector.extract_strided_slice %48 {offsets = [32, 0], sizes = [64, 128], strides = [1, 1]} : vector<96x128xbf16> to vector<64x128xbf16>
    %c2_33 = arith.constant 2 : index
    %c0_34 = arith.constant 0 : index
    %c0_35 = arith.constant 0 : index
    %59 = vector.load %arg8[%c2_33, %c0_34, %c0_35] : memref<3x128x128xbf16, #tpu.memory_space<vmem>>, vector<1x128x128xbf16>
    %60 = vector.shape_cast %59 : vector<1x128x128xbf16> to vector<128x128xbf16>
    %cst_36 = arith.constant dense<0.000000e+00> : vector<64x128xf32>
    %61 = tpu.matmul %58, %60, %cst_36 {dimension_numbers = #tpu.dot_dimension_numbers<[1], [0], [0], [1], [0, 0, 1, 1], [], []>} : vector<64x128xbf16>, vector<128x128xbf16>, vector<64x128xf32> -> vector<64x128xf32>
    %62 = arith.addf %57, %61 : vector<64x128xf32>
    %c0_37 = arith.constant 0 : index
    %c0_38 = arith.constant 0 : index
    %63 = vector.load %arg9[%c0_37, %c0_38] : memref<1x128xf32, #tpu.memory_space<vmem>>, vector<1x128xf32>
    %64 = vector.broadcast %63 : vector<1x128xf32> to vector<64x128xf32>
    %65 = arith.addf %62, %64 : vector<64x128xf32>
    %cst_39 = arith.constant 0.000000e+00 : f32
    %66 = vector.broadcast %cst_39 : f32 to vector<64x128xf32>
    %67 = arith.maximumf %65, %66 : vector<64x128xf32>
    %68 = vector.extract_strided_slice %67 {offsets = [0, 0], sizes = [16, 128], strides = [1, 1]} : vector<64x128xf32> to vector<16x128xf32>
    %69 = vector.extract_strided_slice %67 {offsets = [16, 0], sizes = [16, 128], strides = [1, 1]} : vector<64x128xf32> to vector<16x128xf32>
    %70 = arith.maximumf %68, %69 : vector<16x128xf32>
    %71 = vector.extract_strided_slice %67 {offsets = [32, 0], sizes = [16, 128], strides = [1, 1]} : vector<64x128xf32> to vector<16x128xf32>
    %72 = vector.extract_strided_slice %67 {offsets = [48, 0], sizes = [16, 128], strides = [1, 1]} : vector<64x128xf32> to vector<16x128xf32>
    %73 = arith.maximumf %71, %72 : vector<16x128xf32>
    %74 = arith.maximumf %70, %73 : vector<16x128xf32>
    %c0_40 = arith.constant 0 : index
    %c0_41 = arith.constant 0 : index
    %75 = vector.load %arg10[%c0_40, %c0_41] : memref<96x16xbf16, #tpu.memory_space<vmem>>, vector<96x16xbf16>
    %76 = arith.truncf %74 : vector<16x128xf32> to vector<16x128xbf16>
    %cst_42 = arith.constant dense<0.000000e+00> : vector<96x128xf32>
    %77 = tpu.matmul %75, %76, %cst_42 {dimension_numbers = #tpu.dot_dimension_numbers<[1], [0], [0], [1], [0, 0, 1, 1], [], []>} : vector<96x16xbf16>, vector<16x128xbf16>, vector<96x128xf32> -> vector<96x128xf32>
    %78 = arith.truncf %77 : vector<96x128xf32> to vector<96x128xbf16>
    %79 = vector.extract_strided_slice %78 {offsets = [0, 0], sizes = [64, 128], strides = [1, 1]} : vector<96x128xbf16> to vector<64x128xbf16>
    %c0_43 = arith.constant 0 : index
    %c0_44 = arith.constant 0 : index
    %c0_45 = arith.constant 0 : index
    %80 = vector.load %arg11[%c0_43, %c0_44, %c0_45] : memref<3x128x128xbf16, #tpu.memory_space<vmem>>, vector<1x128x128xbf16>
    %81 = vector.shape_cast %80 : vector<1x128x128xbf16> to vector<128x128xbf16>
    %cst_46 = arith.constant dense<0.000000e+00> : vector<64x128xf32>
    %82 = tpu.matmul %79, %81, %cst_46 {dimension_numbers = #tpu.dot_dimension_numbers<[1], [0], [0], [1], [0, 0, 1, 1], [], []>} : vector<64x128xbf16>, vector<128x128xbf16>, vector<64x128xf32> -> vector<64x128xf32>
    %83 = vector.extract_strided_slice %78 {offsets = [16, 0], sizes = [64, 128], strides = [1, 1]} : vector<96x128xbf16> to vector<64x128xbf16>
    %c1_47 = arith.constant 1 : index
    %c0_48 = arith.constant 0 : index
    %c0_49 = arith.constant 0 : index
    %84 = vector.load %arg11[%c1_47, %c0_48, %c0_49] : memref<3x128x128xbf16, #tpu.memory_space<vmem>>, vector<1x128x128xbf16>
    %85 = vector.shape_cast %84 : vector<1x128x128xbf16> to vector<128x128xbf16>
    %cst_50 = arith.constant dense<0.000000e+00> : vector<64x128xf32>
    %86 = tpu.matmul %83, %85, %cst_50 {dimension_numbers = #tpu.dot_dimension_numbers<[1], [0], [0], [1], [0, 0, 1, 1], [], []>} : vector<64x128xbf16>, vector<128x128xbf16>, vector<64x128xf32> -> vector<64x128xf32>
    %87 = arith.addf %82, %86 : vector<64x128xf32>
    %88 = vector.extract_strided_slice %78 {offsets = [32, 0], sizes = [64, 128], strides = [1, 1]} : vector<96x128xbf16> to vector<64x128xbf16>
    %c2_51 = arith.constant 2 : index
    %c0_52 = arith.constant 0 : index
    %c0_53 = arith.constant 0 : index
    %89 = vector.load %arg11[%c2_51, %c0_52, %c0_53] : memref<3x128x128xbf16, #tpu.memory_space<vmem>>, vector<1x128x128xbf16>
    %90 = vector.shape_cast %89 : vector<1x128x128xbf16> to vector<128x128xbf16>
    %cst_54 = arith.constant dense<0.000000e+00> : vector<64x128xf32>
    %91 = tpu.matmul %88, %90, %cst_54 {dimension_numbers = #tpu.dot_dimension_numbers<[1], [0], [0], [1], [0, 0, 1, 1], [], []>} : vector<64x128xbf16>, vector<128x128xbf16>, vector<64x128xf32> -> vector<64x128xf32>
    %92 = arith.addf %87, %91 : vector<64x128xf32>
    %c0_55 = arith.constant 0 : index
    %c0_56 = arith.constant 0 : index
    %93 = vector.load %arg12[%c0_55, %c0_56] : memref<1x128xf32, #tpu.memory_space<vmem>>, vector<1x128xf32>
    %94 = vector.broadcast %93 : vector<1x128xf32> to vector<64x128xf32>
    %95 = arith.addf %92, %94 : vector<64x128xf32>
    %cst_57 = arith.constant 0.000000e+00 : f32
    %96 = vector.broadcast %cst_57 : f32 to vector<64x128xf32>
    %97 = arith.maximumf %95, %96 : vector<64x128xf32>
    %98 = vector.extract_strided_slice %97 {offsets = [0, 0], sizes = [16, 128], strides = [1, 1]} : vector<64x128xf32> to vector<16x128xf32>
    %99 = vector.extract_strided_slice %97 {offsets = [16, 0], sizes = [16, 128], strides = [1, 1]} : vector<64x128xf32> to vector<16x128xf32>
    %100 = arith.maximumf %98, %99 : vector<16x128xf32>
    %101 = vector.extract_strided_slice %97 {offsets = [32, 0], sizes = [16, 128], strides = [1, 1]} : vector<64x128xf32> to vector<16x128xf32>
    %102 = vector.extract_strided_slice %97 {offsets = [48, 0], sizes = [16, 128], strides = [1, 1]} : vector<64x128xf32> to vector<16x128xf32>
    %103 = arith.maximumf %101, %102 : vector<16x128xf32>
    %104 = arith.maximumf %100, %103 : vector<16x128xf32>
    %c0_58 = arith.constant 0 : index
    %c0_59 = arith.constant 0 : index
    %105 = vector.load %arg13[%c0_58, %c0_59] : memref<8x16xbf16, #tpu.memory_space<vmem>>, vector<8x16xbf16>
    %106 = arith.truncf %104 : vector<16x128xf32> to vector<16x128xbf16>
    %cst_60 = arith.constant dense<0.000000e+00> : vector<8x128xf32>
    %107 = tpu.matmul %105, %106, %cst_60 {dimension_numbers = #tpu.dot_dimension_numbers<[1], [0], [0], [1], [0, 0, 1, 1], [], []>} : vector<8x16xbf16>, vector<16x128xbf16>, vector<8x128xf32> -> vector<8x128xf32>
    %108 = arith.truncf %107 : vector<8x128xf32> to vector<8x128xbf16>
    %c0_61 = arith.constant 0 : index
    %c0_62 = arith.constant 0 : index
    %109 = vector.load %arg14[%c0_61, %c0_62] : memref<128x128xbf16, #tpu.memory_space<vmem>>, vector<128x128xbf16>
    %cst_63 = arith.constant dense<0.000000e+00> : vector<8x128xf32>
    %110 = tpu.matmul %108, %109, %cst_63 {dimension_numbers = #tpu.dot_dimension_numbers<[1], [0], [0], [1], [0, 0, 1, 1], [], []>} : vector<8x128xbf16>, vector<128x128xbf16>, vector<8x128xf32> -> vector<8x128xf32>
    %c0_64 = arith.constant 0 : index
    %c0_65 = arith.constant 0 : index
    %111 = vector.load %arg15[%c0_64, %c0_65] : memref<1x128xf32, #tpu.memory_space<vmem>>, vector<1x128xf32>
    %112 = vector.broadcast %111 : vector<1x128xf32> to vector<8x128xf32>
    %113 = arith.addf %110, %112 : vector<8x128xf32>
    %cst_66 = arith.constant dense<0xFF800000> : vector<8xf32>
    %114 = vector.multi_reduction <maximumf>, %113, %cst_66 [1] : vector<8x128xf32> to vector<8xf32>
    %115 = vector.shape_cast %114 : vector<8xf32> to vector<8x1xf32>
    %116 = vector.broadcast %115 : vector<8x1xf32> to vector<8x128xf32>
    %117 = arith.subf %113, %116 : vector<8x128xf32>
    %118 = math.exp %117 : vector<8x128xf32>
    %cst_67 = arith.constant dense<0.000000e+00> : vector<8xf32>
    %119 = vector.multi_reduction <add>, %118, %cst_67 [1] : vector<8x128xf32> to vector<8xf32>
    %120 = vector.shape_cast %119 : vector<8xf32> to vector<8x1xf32>
    %121 = math.log %120 : vector<8x1xf32>
    %122 = vector.broadcast %121 : vector<8x1xf32> to vector<8x128xf32>
    %123 = arith.subf %117, %122 : vector<8x128xf32>
    %c0_68 = arith.constant 0 : index
    %c0_69 = arith.constant 0 : index
    %124 = vector.load %arg16[%c0_68, %c0_69] : memref<8x128xf32, #tpu.memory_space<vmem>>, vector<8x128xf32>
    tpu.vector_store %arg16[%c0_68, %c0_69], %123 {strides = array<i32>} : memref<8x128xf32, #tpu.memory_space<vmem>>, vector<8x128xf32>,
    return
  }
  func.func @transform_0(%arg0: i32) -> (i32, i32) {
    %c0_i32 = arith.constant 0 : i32
    %c0_i32_0 = arith.constant 0 : i32
    %c0_i32_1 = arith.constant 0 : i32
    return %c0_i32, %c0_i32_0 : i32, i32
  }
  func.func @transform_1(%arg0: i32) -> (i32, i32) {
    %c0_i32 = arith.constant 0 : i32
    %c0_i32_0 = arith.constant 0 : i32
    %c0_i32_1 = arith.constant 0 : i32
    return %c0_i32, %c0_i32_0 : i32, i32
  }
  func.func @transform_2(%arg0: i32) -> (i32, i32) {
    %c0_i32 = arith.constant 0 : i32
    %c0_i32_0 = arith.constant 0 : i32
    %c0_i32_1 = arith.constant 0 : i32
    return %c0_i32, %c0_i32_0 : i32, i32
  }
  func.func @transform_3(%arg0: i32) -> (i32, i32) {
    %c0_i32 = arith.constant 0 : i32
    %c0_i32_0 = arith.constant 0 : i32
    %c0_i32_1 = arith.constant 0 : i32
    return %c0_i32, %c0_i32_0 : i32, i32
  }
  func.func @transform_4(%arg0: i32) -> (i32, i32, i32) {
    %c0_i32 = arith.constant 0 : i32
    %c0_i32_0 = arith.constant 0 : i32
    %c0_i32_1 = arith.constant 0 : i32
    %c0_i32_2 = arith.constant 0 : i32
    return %c0_i32, %c0_i32_0, %c0_i32_1 : i32, i32, i32
  }
  func.func @transform_5(%arg0: i32) -> (i32, i32) {
    %c0_i32 = arith.constant 0 : i32
    %c0_i32_0 = arith.constant 0 : i32
    %c0_i32_1 = arith.constant 0 : i32
    return %c0_i32, %c0_i32_0 : i32, i32
  }
  func.func @transform_6(%arg0: i32) -> (i32, i32) {
    %c0_i32 = arith.constant 0 : i32
    %c0_i32_0 = arith.constant 0 : i32
    %c0_i32_1 = arith.constant 0 : i32
    return %c0_i32, %c0_i32_0 : i32, i32
  }
  func.func @transform_7(%arg0: i32) -> (i32, i32, i32) {
    %c0_i32 = arith.constant 0 : i32
    %c0_i32_0 = arith.constant 0 : i32
    %c0_i32_1 = arith.constant 0 : i32
    %c0_i32_2 = arith.constant 0 : i32
    return %c0_i32, %c0_i32_0, %c0_i32_1 : i32, i32, i32
  }
  func.func @transform_8(%arg0: i32) -> (i32, i32) {
    %c0_i32 = arith.constant 0 : i32
    %c0_i32_0 = arith.constant 0 : i32
    %c0_i32_1 = arith.constant 0 : i32
    return %c0_i32, %c0_i32_0 : i32, i32
  }
  func.func @transform_9(%arg0: i32) -> (i32, i32) {
    %c0_i32 = arith.constant 0 : i32
    %c0_i32_0 = arith.constant 0 : i32
    %c0_i32_1 = arith.constant 0 : i32
    return %c0_i32, %c0_i32_0 : i32, i32
  }
  func.func @transform_10(%arg0: i32) -> (i32, i32, i32) {
    %c0_i32 = arith.constant 0 : i32
    %c0_i32_0 = arith.constant 0 : i32
    %c0_i32_1 = arith.constant 0 : i32
    %c0_i32_2 = arith.constant 0 : i32
    return %c0_i32, %c0_i32_0, %c0_i32_1 : i32, i32, i32
  }
  func.func @transform_11(%arg0: i32) -> (i32, i32) {
    %c0_i32 = arith.constant 0 : i32
    %c0_i32_0 = arith.constant 0 : i32
    %c0_i32_1 = arith.constant 0 : i32
    return %c0_i32, %c0_i32_0 : i32, i32
  }
  func.func @transform_12(%arg0: i32) -> (i32, i32) {
    %c0_i32 = arith.constant 0 : i32
    %c0_i32_0 = arith.constant 0 : i32
    %c0_i32_1 = arith.constant 0 : i32
    return %c0_i32, %c0_i32_0 : i32, i32
  }
  func.func @transform_13(%arg0: i32) -> (i32, i32) {
    %c0_i32 = arith.constant 0 : i32
    %c0_i32_0 = arith.constant 0 : i32
    %c0_i32_1 = arith.constant 0 : i32
    return %c0_i32, %c0_i32_0 : i32, i32
  }
  func.func @transform_14(%arg0: i32) -> (i32, i32) {
    %c0_i32 = arith.constant 0 : i32
    %c0_i32_0 = arith.constant 0 : i32
    %c0_i32_1 = arith.constant 0 : i32
    return %c0_i32, %c0_i32_0 : i32, i32
  }
  func.func @transform_15(%arg0: i32) -> (i32, i32) {
    %c0_i32 = arith.constant 0 : i32
    %c0_i32_0 = arith.constant 0 : i32
    %c0_i32_1 = arith.constant 0 : i32
    return %c0_i32, %c0_i32_0 : i32, i32
  }
}

</mosaic_0001>

<bundles_post_ra>
// kernel: m5_forward.1
= control target key start
LH: loop header
LB: loop body
LE: loop exit
PB: predicated region body
PF: predicated region fallthrough
CT: control target
= control target key end

     0   :  { %vm2806_vm0 = vcmask 523264   ;;  %vm3381_vm1 = vcmask 130048   ;;  %vm5489_vm2 = vmmov 0   ;;  %s6816_s1 = inlined_call_operand.vmem [shape: bf16[128,128], index: 1, kind: input, shape index: {}]   ;;  %s6817_s0 = inlined_call_operand.vmem [shape: bf16[1024,128], index: 0, kind: input, shape index: {}]   ;;  %s6818_s2 = inlined_call_operand.vmem [shape: f32[1,128], index: 2, kind: input, shape index: {}]   ;;  %s6819_s3 = inlined_call_operand.vmem [shape: bf16[384,256], index: 3, kind: input, shape index: {}]   ;;  %s6820_s4 = inlined_call_operand.vmem [shape: bf16[3,128,128], index: 4, kind: input, shape index: {}]   ;;  %s6821_s6 = inlined_call_operand.vmem [shape: bf16[96,64], index: 6, kind: input, shape index: {}]   ;;  %s6822_s7 = inlined_call_operand.vmem [shape: bf16[3,128,128], index: 7, kind: input, shape index: {}]   ;;  %s6823_s5 = inlined_call_operand.vmem [shape: f32[1,128], index: 5, kind: input, shape index: {}]   ;;  %s6824_s9 = inlined_call_operand.vmem [shape: bf16[96,16], index: 9, kind: input, shape index: {}]   ;;  %s6825_s10 = inlined_call_operand.vmem [shape: bf16[3,128,128], index: 10, kind: input, shape index: {}]   ;;  %s6826_s8 = inlined_call_operand.vmem [shape: f32[1,128], index: 8, kind: input, shape index: {}]   ;;  %s6827_s13 = inlined_call_operand.vmem [shape: bf16[128,128], index: 13, kind: input, shape index: {}]   ;;  %s6828_s11 = inlined_call_operand.vmem [shape: f32[1,128], index: 11, kind: input, shape index: {}]   ;;  %s6829_s12 = inlined_call_operand.vmem [shape: bf16[8,16], index: 12, kind: input, shape index: {}]   ;;  %s6830_s14 = inlined_call_operand.vmem [shape: f32[1,128], index: 14, kind: input, shape index: {}]   ;;  %s6831_s15 = inlined_call_operand.vmem [shape: f32[8,128], index: 15, kind: output, shape index: {}]  }
   0x1   :  { %v5246_v0 = vld [vmem:[%s6816_s1] sm:$0xff]   ;;  %v5247_v1 = vld [vmem:[%s6816_s1 + $0x8] sm:$0xff]   ;;  %v5248_v2 = vld [vmem:[%s6816_s1 + $0x10] sm:$0xff]  }
   0x2   :  { %4655 = vmatprep.subr.bf16.mxu0 %v5246_v0  ;;  %v5249_v3 = vld [vmem:[%s6816_s1 + $0x18] sm:$0xff]   ;;  %v5254_v4 = vld [vmem:[%s6817_s0] sm:$0xff]   ;;  %v5251_v6 = vld [vmem:[%s6816_s1 + $0x28] sm:$0xff]  }
   0x3   :  { %4656 = vmatpush3.bf16.msra.mxu0 %v5246_v0  ;;  %4671 = vmatprep.mubr.bf16.mxu0 %v5254_v4  ;;  %v5250_v5 = vld [vmem:[%s6816_s1 + $0x20] sm:$0xff]   ;;  %v5252_v7 = vld [vmem:[%s6816_s1 + $0x30] sm:$0xff]   ;;  %v5253_v8 = vld [vmem:[%s6816_s1 + $0x38] sm:$0xff]  }
   0x4   :  { %4657 = vmatprep.subr.bf16.mxu0 %v5247_v1  ;;  %v5255_v9 = vld [vmem:[%s6817_s0 + $0x8] sm:$0xff]   ;;  %v5256_v10 = vld [vmem:[%s6817_s0 + $0x10] sm:$0xff]   ;;  %v5257_v11 = vld [vmem:[%s6817_s0 + $0x18] sm:$0xff]  }
   0x5   :  { %v5258_v12 = vld [vmem:[%s6817_s0 + $0x20] sm:$0xff]   ;;  %v5259_v13 = vld [vmem:[%s6817_s0 + $0x28] sm:$0xff]   ;;  %v5260_v14 = vld [vmem:[%s6817_s0 + $0x30] sm:$0xff]  }
   0x6   :  { %v5261_v15 = vld [vmem:[%s6817_s0 + $0x38] sm:$0xff]   ;;  %v5262_v16 = vld [vmem:[%s6817_s0 + $0x40] sm:$0xff]   ;;  %v5263_v17 = vld [vmem:[%s6817_s0 + $0x48] sm:$0xff]  }
   0x7   :  { %4658 = vmatpush3.bf16.msra.mxu0 %v5247_v1  ;;  %v5264_v18 = vld [vmem:[%s6817_s0 + $0x50] sm:$0xff]   ;;  %v5265_v19 = vld [vmem:[%s6817_s0 + $0x58] sm:$0xff]   ;;  %v5266_v20 = vld [vmem:[%s6817_s0 + $0x60] sm:$0xff]  }
   0x8   :  { %4659 = vmatprep.subr.bf16.mxu0 %v5248_v2  ;;  %v5267_v21 = vld [vmem:[%s6817_s0 + $0x68] sm:$0xff]   ;;  %v5268_v22 = vld [vmem:[%s6817_s0 + $0x70] sm:$0xff]   ;;  %v5269_v23 = vld [vmem:[%s6817_s0 + $0x78] sm:$0xff]  }
   0x9   :  { %v5270_v24 = vld [vmem:[%s6817_s0 + $0x80] sm:$0xff]   ;;  %v5271_v25 = vld [vmem:[%s6817_s0 + $0x88] sm:$0xff]   ;;  %v5272_v26 = vld [vmem:[%s6817_s0 + $0x90] sm:$0xff]  }
   0xa   :  { %v5273_v27 = vld [vmem:[%s6817_s0 + $0x98] sm:$0xff]   ;;  %v5274_v28 = vld [vmem:[%s6817_s0 + $0xa0] sm:$0xff]   ;;  %v5275_v29 = vld [vmem:[%s6817_s0 + $0xa8] sm:$0xff]  }
   0xb   :  { %4660 = vmatpush3.bf16.msra.mxu0 %v5248_v2  ;;  %v5276_v30 = vld [vmem:[%s6817_s0 + $0xb0] sm:$0xff]   ;;  %v5277_v31 = vld [vmem:[%s6817_s0 + $0xb8] sm:$0xff]   ;;  %v5278_v32 = vld [vmem:[%s6817_s0 + $0xc0] sm:$0xff]  }
   0xc   :  { %4661 = vmatprep.subr.bf16.mxu0 %v5249_v3  ;;  %v5279_v33 = vld [vmem:[%s6817_s0 + $0xc8] sm:$0xff]   ;;  %v5280_v34 = vld [vmem:[%s6817_s0 + $0xd0] sm:$0xff]   ;;  %v5281_v35 = vld [vmem:[%s6817_s0 + $0xd8] sm:$0xff]  }
   0xd   :  { %v5282_v36 = vld [vmem:[%s6817_s0 + $0xe0] sm:$0xff]   ;;  %v5283_v37 = vld [vmem:[%s6817_s0 + $0xe8] sm:$0xff]   ;;  %v5284_v38 = vld [vmem:[%s6817_s0 + $0xf0] sm:$0xff]  }
   0xe   :  { %v5285_v39 = vld [vmem:[%s6817_s0 + $0xf8] sm:$0xff]   ;;  %v5286_v40 = vld [vmem:[%s6817_s0 + $0x100] sm:$0xff]   ;;  %v5287_v41 = vld [vmem:[%s6817_s0 + $0x108] sm:$0xff]  }
   0xf   :  { %4662 = vmatpush3.bf16.msra.mxu0 %v5249_v3  ;;  %v5288_v42 = vld [vmem:[%s6817_s0 + $0x110] sm:$0xff]   ;;  %v5289_v43 = vld [vmem:[%s6817_s0 + $0x118] sm:$0xff]   ;;  %v5290_v44 = vld [vmem:[%s6817_s0 + $0x120] sm:$0xff]  }
  0x10   :  { %4663 = vmatprep.subr.bf16.mxu0 %v5250_v5  ;;  %v5291_v45 = vld [vmem:[%s6817_s0 + $0x128] sm:$0xff]   ;;  %v5292_v46 = vld [vmem:[%s6817_s0 + $0x130] sm:$0xff]   ;;  %v5293_v47 = vld [vmem:[%s6817_s0 + $0x138] sm:$0xff]  }
  0x11   :  { %v5294_v48 = vld [vmem:[%s6817_s0 + $0x140] sm:$0xff]   ;;  %v5295_v49 = vld [vmem:[%s6817_s0 + $0x148] sm:$0xff]   ;;  %v5296_v50 = vld [vmem:[%s6817_s0 + $0x150] sm:$0xff]  }
  0x12   :  { %v5297_v51 = vld [vmem:[%s6817_s0 + $0x158] sm:$0xff]   ;;  %v5298_v52 = vld [vmem:[%s6817_s0 + $0x160] sm:$0xff]   ;;  %v5299_v53 = vld [vmem:[%s6817_s0 + $0x168] sm:$0xff]  }
  0x13   :  { %4664 = vmatpush3.bf16.msra.mxu0 %v5250_v5  ;;  %v5300_v54 = vld [vmem:[%s6817_s0 + $0x170] sm:$0xff]   ;;  %v5301_v55 = vld [vmem:[%s6817_s0 + $0x178] sm:$0xff]   ;;  %v5302_v56 = vld [vmem:[%s6817_s0 + $0x180] sm:$0xff]  }
  0x14   :  { %4665 = vmatprep.subr.bf16.mxu0 %v5251_v6  ;;  %v5303_v57 = vld [vmem:[%s6817_s0 + $0x188] sm:$0xff]   ;;  %v5304_v58 = vld [vmem:[%s6817_s0 + $0x190] sm:$0xff]   ;;  %v5305_v59 = vld [vmem:[%s6817_s0 + $0x198] sm:$0xff]  }
  0x15   :  { %v5306_v60 = vld [vmem:[%s6817_s0 + $0x1a0] sm:$0xff]   ;;  %v5307_v61 = vld [vmem:[%s6817_s0 + $0x1a8] sm:$0xff]   ;;  %v5308_v62 = vld [vmem:[%s6817_s0 + $0x1b0] sm:$0xff]  }
  0x16   :  { %v5309_v1 = vld [vmem:[%s6817_s0 + $0x1b8] sm:$0xff]   ;;  %v5310_v3 = vld [vmem:[%s6817_s0 + $0x1c0] sm:$0xff]  }
  0x17   :  { %4666 = vmatpush3.bf16.msra.mxu0 %v5251_v6 }
  0x18   :  { %4667 = vmatprep.subr.bf16.mxu0 %v5252_v7 }
  0x1b   :  { %4668 = vmatpush3.bf16.msra.mxu0 %v5252_v7  ;;  %v5311_v7 = vld [vmem:[%s6817_s0 + $0x1c8] sm:$0xff]  }
  0x1c   :  { %4669 = vmatprep.subr.bf16.mxu0 %v5253_v8 }
  0x1f   :  { %4670 = vmatpush3.bf16.msra.mxu0 %v5253_v8 }
  0x22   :  { %4672 = vmatmul.mubr.bf16.vlgmr.msra.gmra.mrb[0].mxu0 %v5255_v9  ;;  %v5312_v9 = vld [vmem:[%s6817_s0 + $0x1d0] sm:$0xff]  }
  0x23   :  { %4675 = vmatprep.mubr.bf16.mxu0 %v5256_v10 }
  0x2a   :  { %4676 = vmatmul.mubr.bf16.gmra.mrb[4].mxu0 %v5257_v11 }
  0x2b   :  { %4679 = vmatprep.mubr.bf16.mxu0 %v5258_v12 }
  0x32   :  { %4680 = vmatmul.mubr.bf16.gmra.mrb[8].mxu0 %v5259_v13  ;;  %v5313_v13 = vld [vmem:[%s6817_s0 + $0x1d8] sm:$0xff]  }
  0x33   :  { %4683 = vmatprep.mubr.bf16.mxu0 %v5260_v14 }
  0x3a   :  { %4684 = vmatmul.mubr.bf16.gmra.mrb[12].mxu0 %v5261_v15  ;;  %v5314_v15 = vld [vmem:[%s6817_s0 + $0x1e0] sm:$0xff]  }
  0x3b   :  { %4687 = vmatprep.mubr.bf16.mxu0 %v5262_v16 }
  0x42   :  { %4688 = vmatmul.mubr.bf16.gmra.mrb[16].mxu0 %v5263_v17 }
  0x43   :  { %4691 = vmatprep.mubr.bf16.mxu0 %v5264_v18 }
  0x4a   :  { %4692 = vmatmul.mubr.bf16.gmra.mrb[20].mxu0 %v5265_v19  ;;  %v5315_v19 = vld [vmem:[%s6817_s0 + $0x1e8] sm:$0xff]  }
  0x4b   :  { %4695 = vmatprep.mubr.bf16.mxu0 %v5266_v20 }
  0x52   :  { %4696 = vmatmul.mubr.bf16.gmra.mrb[24].mxu0 %v5267_v21  ;;  %v5316_v21 = vld [vmem:[%s6817_s0 + $0x1f0] sm:$0xff]  }
  0x53   :  { %4699 = vmatprep.mubr.bf16.mxu0 %v5268_v22 }
  0x5a   :  { %4700 = vmatmul.mubr.bf16.gmra.mrb[28].mxu0 %v5269_v23 }
  0x5b   :  { %4703 = vmatprep.mubr.bf16.mxu0 %v5270_v24 }
  0x62   :  { %4704 = vmatmul.mubr.bf16.gmra.mrb[32].mxu0 %v5271_v25  ;;  %v5317_v25 = vld [vmem:[%s6817_s0 + $0x1f8] sm:$0xff]  }
  0x63   :  { %4707 = vmatprep.mubr.bf16.mxu0 %v5272_v26 }
  0x6a   :  { %4708 = vmatmul.mubr.bf16.gmra.mrb[36].mxu0 %v5273_v27 }
  0x6b   :  { %4711 = vmatprep.mubr.bf16.mxu0 %v5274_v28 }
  0x72   :  { %4712 = vmatmul.mubr.bf16.gmra.mrb[40].mxu0 %v5275_v29 }
  0x73   :  { %4715 = vmatprep.mubr.bf16.mxu0 %v5276_v30 }
  0x7a   :  { %4716 = vmatmul.mubr.bf16.gmra.mrb[44].mxu0 %v5277_v31 }
  0x7b   :  { %4719 = vmatprep.mubr.bf16.mxu0 %v5278_v32 }
  0x82   :  { %4720 = vmatmul.mubr.bf16.gmra.mrb[48].mxu0 %v5279_v33 }
  0x83   :  { %4723 = vmatprep.mubr.bf16.mxu0 %v5280_v34 }
  0x8a   :  { %4724 = vmatmul.mubr.bf16.gmra.mrb[52].mxu0 %v5281_v35 }
  0x8b   :  { %4727 = vmatprep.mubr.bf16.mxu0 %v5282_v36 }
  0x92   :  { %4728 = vmatmul.mubr.bf16.gmra.mrb[56].mxu0 %v5283_v37 }
  0x93   :  { %4731 = vmatprep.mubr.bf16.mxu0 %v5284_v38 }
  0x9a   :  { %4732 = vmatmul.mubr.bf16.gmra.mrb[60].mxu0 %v5285_v39 }
  0x9b   :  { %4735 = vmatprep.mubr.bf16.mxu0 %v5286_v40  ;;  %v5845_v40 = vld [vmem:[%s6818_s2] ss:$0 sm:$0xff] }
  0xa2   :  { %4736 = vmatmul.mubr.bf16.gmra.mrb[64].mxu0 %v5287_v41 }
  0xa3   :  { %4739 = vmatprep.mubr.bf16.mxu0 %v5288_v42 }
  0xaa   :  { %4740 = vmatmul.mubr.bf16.gmra.mrb[68].mxu0 %v5289_v43 }
  0xab   :  { %4743 = vmatprep.mubr.bf16.mxu0 %v5290_v44 }
  0xb2   :  { %4744 = vmatmul.mubr.bf16.gmra.mrb[72].mxu0 %v5291_v45 }
  0xb3   :  { %4747 = vmatprep.mubr.bf16.mxu0 %v5292_v46 }
  0xba   :  { %4748 = vmatmul.mubr.bf16.gmra.mrb[76].mxu0 %v5293_v47 }
  0xbb   :  { %4751 = vmatprep.mubr.bf16.mxu0 %v5294_v48 }
  0xc2   :  { %4752 = vmatmul.mubr.bf16.gmra.mrb[80].mxu0 %v5295_v49 }
  0xc3   :  { %4755 = vmatprep.mubr.bf16.mxu0 %v5296_v50 }
  0xca   :  { %4756 = vmatmul.mubr.bf16.gmra.mrb[84].mxu0 %v5297_v51 }
  0xcb   :  { %4759 = vmatprep.mubr.bf16.mxu0 %v5298_v52 }
  0xd2   :  { %4760 = vmatmul.mubr.bf16.gmra.mrb[88].mxu0 %v5299_v53 }
  0xd3   :  { %4763 = vmatprep.mubr.bf16.mxu0 %v5300_v54 }
  0xda   :  { %4764 = vmatmul.mubr.bf16.gmra.mrb[92].mxu0 %v5301_v55 }
  0xdb   :  { %4767 = vmatprep.mubr.bf16.mxu0 %v5302_v56 }
  0xe2   :  { %4768 = vmatmul.mubr.bf16.gmra.mrb[96].mxu0 %v5303_v57 }
  0xe3   :  { %4771 = vmatprep.mubr.bf16.mxu0 %v5304_v58 }
  0xea   :  { %4772 = vmatmul.mubr.bf16.gmra.mrb[100].mxu0 %v5305_v59 }
  0xeb   :  { %4775 = vmatprep.mubr.bf16.mxu0 %v5306_v60 }
  0xf2   :  { %4776 = vmatmul.mubr.bf16.gmra.mrb[104].mxu0 %v5307_v61 }
  0xf3   :  { %4779 = vmatprep.mubr.bf16.mxu0 %v5308_v62 }
  0xf5   :  { %v4673_v63 = vpop.f32.mrb[0].mxu0 }
  0xf6   :  { %v668_v0 = vpop.f32.mrb[1].mxu0  ;;  %v677_v41 = vadd.f32 %v4673_v63, %v5845_v40 }
  0xf7   :  { %v4674_v2 = vpop.f32.mrb[2].mxu0  ;;  %v669_v42 = vadd.f32 %v5845_v40, %v668_v0 }
  0xf8   :  { %v671_v4 = vpop.f32.mrb[3].mxu0  ;;  %v680_v44 = vadd.f32 %v4674_v2, %v5845_v40  ;;  %v1181_v50 = vmax.f32 %v677_v41, 0.0 }
  0xf9   :  { %v672_v47 = vadd.f32 %v5845_v40, %v671_v4  ;;  %v1179_v54 = vmax.f32 %v669_v42, 0.0 }
  0xfa   :  { %4780 = vmatmul.mubr.bf16.gmra.mrb[108].mxu0 %v5309_v1  ;;  %v1182_v57 = vmax.f32 %v680_v44, 0.0 }
  0xfb   :  { %4783 = vmatprep.mubr.bf16.mxu0 %v5310_v3  ;;  %v1180_v60 = vmax.f32 %v672_v47, 0.0 }
  0xfd   :  { %v5765_v5 = vpop.f32.mrb[4].mxu0 }
  0xfe   :  { %v5767_v6 = vpop.f32.mrb[5].mxu0  ;;  %v693_v63 = vadd.f32 %v5765_v5, %v5845_v40 }
  0xff   :  { %v5772_v8 = vpop.f32.mrb[6].mxu0  ;;  %v685_v1 = vadd.f32 %v5845_v40, %v5767_v6 }
 0x100   :  { %v5777_v10 = vpop.f32.mrb[7].mxu0  ;;  %v696_v4 = vadd.f32 %v5772_v8, %v5845_v40 }
 0x101   :  { %v1183_v41 = vmax.f32 %v685_v1, 0.0 }
 0x102   :  { %4784 = vmatmul.mubr.bf16.gmra.mrb[112].mxu0 %v5311_v7  ;;  %v1186_v44 = vmax.f32 %v696_v4, 0.0 }
 0x103   :  { %4787 = vmatprep.mubr.bf16.mxu0 %v5312_v9 }
 0x105   :  { %v5779_v11 = vpop.f32.mrb[8].mxu0 }
 0x106   :  { %v5781_v12 = vpop.f32.mrb[9].mxu0 }
 0x107   :  { %v5786_v14 = vpop.f32.mrb[10].mxu0 }
 0x108   :  { %v5791_v16 = vpop.f32.mrb[11].mxu0 }
 0x10a   :  { %4788 = vmatmul.mubr.bf16.gmra.mrb[116].mxu0 %v5313_v13  ;;  %v688_v13 = vadd.f32 %v5845_v40, %v5777_v10 }
 0x10b   :  { %4791 = vmatprep.mubr.bf16.mxu0 %v5314_v15 }
 0x10c   :  { %v1184_v10 = vmax.f32 %v688_v13, 0.0 }
 0x10d   :  { %v5793_v17 = vpop.f32.mrb[12].mxu0 }
 0x10e   :  { %v5795_v18 = vpop.f32.mrb[13].mxu0 }
 0x10f   :  { %v5800_v20 = vpop.f32.mrb[14].mxu0 }
 0x110   :  { %v5805_v22 = vpop.f32.mrb[15].mxu0 }
 0x112   :  { %4792 = vmatmul.mubr.bf16.gmra.mrb[120].mxu0 %v5315_v19  ;;  %v1185_v19 = vmax.f32 %v693_v63, 0.0 }
 0x113   :  { %4795 = vmatprep.mubr.bf16.mxu0 %v5316_v21 }
 0x115   :  { %v5807_v23 = vpop.f32.mrb[16].mxu0 }
 0x116   :  { %v5809_v24 = vpop.f32.mrb[17].mxu0 }
 0x117   :  { %v5814_v26 = vpop.f32.mrb[18].mxu0 }
 0x118   :  { %v5816_v27 = vpop.f32.mrb[19].mxu0 }
 0x11a   :  { %4796 = vmatmul.mubr.bf16.gmra.mrb[124].mxu0 %v5317_v25 }
 0x11d   :  { %v5818_v28 = vpop.f32.mrb[20].mxu0 }
 0x11e   :  { %v5820_v29 = vpop.f32.mrb[21].mxu0 }
 0x11f   :  { %v5822_v30 = vpop.f32.mrb[22].mxu0 }
 0x120   :  { %v5824_v31 = vpop.f32.mrb[23].mxu0 }
 0x125   :  { %v5826_v32 = vpop.f32.mrb[24].mxu0 }
 0x126   :  { %v5828_v33 = vpop.f32.mrb[25].mxu0 }
 0x127   :  { %v5830_v34 = vpop.f32.mrb[26].mxu0 }
 0x128   :  { %v5832_v35 = vpop.f32.mrb[27].mxu0 }
 0x12d   :  { %v5834_v36 = vpop.f32.mrb[28].mxu0 }
 0x12e   :  { %v5836_v37 = vpop.f32.mrb[29].mxu0 }
 0x12f   :  { %v5838_v38 = vpop.f32.mrb[30].mxu0 }
 0x130   :  { %v5840_v39 = vpop.f32.mrb[31].mxu0 }
 0x135   :  { %v4705_v43 = vpop.f32.mrb[32].mxu0 }
 0x136   :  { %v805_v45 = vadd.f32 %v4705_v43, %v5845_v40  ;;  %v796_v46 = vpop.f32.mrb[33].mxu0 }
 0x137   :  { %v797_v48 = vadd.f32 %v5845_v40, %v796_v46  ;;  %v4706_v49 = vpop.f32.mrb[34].mxu0  ;;  %v6832_v46 = vmov 0  }
 0x138   :  { %v1213_v51 = vmax.f32 %v805_v45, 0.0  ;;  %v808_v52 = vadd.f32 %v4706_v49, %v5845_v40  ;;  %v799_v53 = vpop.f32.mrb[35].mxu0  ;;  %1707 = vmatprep.subr.bf16.mxu1 %v6832_v46  ;;  %v709_v49 = vadd.f32 %v5779_v11, %v5845_v40 }
 0x139   :  { %v1211_v55 = vmax.f32 %v797_v48, 0.0  ;;  %v800_v56 = vadd.f32 %v5845_v40, %v799_v53 }
 0x13a   :  { %v5855_v58 = vmax.f32 %v1181_v50, %v1213_v51  ;;  %v1214_v59 = vmax.f32 %v808_v52, 0.0  ;;  %v701_v51 = vadd.f32 %v5845_v40, %v5781_v12 }
 0x13b   :  { %v5857_v61 = vmax.f32 %v1179_v54, %v1211_v55  ;;  %v1212_v62 = vmax.f32 %v800_v56, 0.0  ;;  %v712_v54 = vadd.f32 %v5786_v14, %v5845_v40 }
 0x13c   :  { %v5861_v0 = vmax.f32 %v1182_v57, %v1214_v59  ;;  %v704_v57 = vadd.f32 %v5845_v40, %v5791_v16  ;;  %v1187_v1 = vmax.f32 %v701_v51, 0.0 }
 0x13d   :  { %v5865_v2 = vmax.f32 %v1180_v60, %v1212_v62  ;;  %v4709_v3 = vpop.f32.mrb[36].mxu0  ;;  %v1189_v60 = vmax.f32 %v709_v49, 0.0 }
 0x13e   :  { %v821_v7 = vadd.f32 %v4709_v3, %v5845_v40  ;;  %v812_v9 = vpop.f32.mrb[37].mxu0  ;;  %v1188_v13 = vmax.f32 %v704_v57, 0.0 }
 0x13f   :  { %v813_v15 = vadd.f32 %v5845_v40, %v812_v9  ;;  %v4710_v5 = vpop.f32.mrb[38].mxu0 }
 0x140   :  { %v1217_v21 = vmax.f32 %v821_v7, 0.0  ;;  %v824_v25 = vadd.f32 %v4710_v5, %v5845_v40  ;;  %v815_v6 = vpop.f32.mrb[39].mxu0  ;;  %v1190_v7 = vmax.f32 %v712_v54, 0.0  ;;  %v725_v5 = vadd.f32 %v5793_v17, %v5845_v40 }
 0x141   :  { %v1215_v42 = vmax.f32 %v813_v15, 0.0  ;;  %v816_v43 = vadd.f32 %v5845_v40, %v815_v6 }
 0x142   :  { %v5875_v8 = vmax.f32 %v1185_v19, %v1217_v21  ;;  %v1218_v45 = vmax.f32 %v824_v25, 0.0  ;;  %v717_v21 = vadd.f32 %v5845_v40, %v5795_v18 }
 0x143   :  { %v5878_v47 = vmax.f32 %v1183_v41, %v1215_v42  ;;  %v1216_v48 = vmax.f32 %v816_v43, 0.0  ;;  %v728_v41 = vadd.f32 %v5800_v20, %v5845_v40 }
 0x144   :  { %v5882_v50 = vmax.f32 %v1186_v44, %v1218_v45  ;;  %v720_v44 = vadd.f32 %v5845_v40, %v5805_v22  ;;  %v1191_v51 = vmax.f32 %v717_v21, 0.0 }
 0x145   :  { %v5886_v52 = vmax.f32 %v1184_v10, %v1216_v48  ;;  %v4713_v53 = vpop.f32.mrb[40].mxu0  ;;  %v1193_v10 = vmax.f32 %v725_v5, 0.0 }
 0x146   :  { %v837_v55 = vadd.f32 %v4713_v53, %v5845_v40  ;;  %v828_v56 = vpop.f32.mrb[41].mxu0  ;;  %v1192_v57 = vmax.f32 %v720_v44, 0.0 }
 0x147   :  { %v829_v59 = vadd.f32 %v5845_v40, %v828_v56  ;;  %v4714_v11 = vpop.f32.mrb[42].mxu0 }
 0x148   :  { %v1221_v62 = vmax.f32 %v837_v55, 0.0  ;;  %v840_v63 = vadd.f32 %v4714_v11, %v5845_v40  ;;  %v831_v12 = vpop.f32.mrb[43].mxu0  ;;  %v1194_v55 = vmax.f32 %v728_v41, 0.0  ;;  %v741_v11 = vadd.f32 %v5807_v23, %v5845_v40 }
 0x149   :  { %v1219_v3 = vmax.f32 %v829_v59, 0.0  ;;  %v832_v4 = vadd.f32 %v5845_v40, %v831_v12 }
 0x14a   :  { %v5896_v14 = vmax.f32 %v1189_v60, %v1221_v62  ;;  %v1222_v9 = vmax.f32 %v840_v63, 0.0  ;;  %v733_v62 = vadd.f32 %v5845_v40, %v5809_v24 }
 0x14b   :  { %v5898_v15 = vmax.f32 %v1187_v1, %v1219_v3  ;;  %v1220_v16 = vmax.f32 %v832_v4, 0.0  ;;  %v744_v1 = vadd.f32 %v5814_v26, %v5845_v40 }
 0x14c   :  { %v5902_v19 = vmax.f32 %v1190_v7, %v1222_v9  ;;  %v736_v7 = vadd.f32 %v5845_v40, %v5816_v27  ;;  %v1195_v21 = vmax.f32 %v733_v62, 0.0 }
 0x14d   :  { %v5906_v25 = vmax.f32 %v1188_v13, %v1220_v16  ;;  %v4717_v6 = vpop.f32.mrb[44].mxu0  ;;  %v1197_v13 = vmax.f32 %v741_v11, 0.0 }
 0x14e   :  { %v853_v42 = vadd.f32 %v4717_v6, %v5845_v40  ;;  %v844_v43 = vpop.f32.mrb[45].mxu0  ;;  %v1196_v44 = vmax.f32 %v736_v7, 0.0 }
 0x14f   :  { %v845_v45 = vadd.f32 %v5845_v40, %v844_v43  ;;  %v4718_v17 = vpop.f32.mrb[46].mxu0 }
 0x150   :  { %v1225_v48 = vmax.f32 %v853_v42, 0.0  ;;  %v856_v49 = vadd.f32 %v4718_v17, %v5845_v40  ;;  %v847_v18 = vpop.f32.mrb[47].mxu0  ;;  %v1198_v42 = vmax.f32 %v744_v1, 0.0  ;;  %v757_v17 = vadd.f32 %v5818_v28, %v5845_v40 }
 0x151   :  { %v1223_v53 = vmax.f32 %v845_v45, 0.0  ;;  %v848_v54 = vadd.f32 %v5845_v40, %v847_v18 }
 0x152   :  { %v5916_v20 = vmax.f32 %v1193_v10, %v1225_v48  ;;  %v1226_v56 = vmax.f32 %v856_v49, 0.0  ;;  %v749_v48 = vadd.f32 %v5845_v40, %v5820_v29 }
 0x153   :  { %v5918_v59 = vmax.f32 %v1191_v51, %v1223_v53  ;;  %v1224_v22 = vmax.f32 %v848_v54, 0.0  ;;  %v760_v51 = vadd.f32 %v5822_v30, %v5845_v40 }
 0x154   :  { %v5922_v60 = vmax.f32 %v1194_v55, %v1226_v56  ;;  %v752_v55 = vadd.f32 %v5845_v40, %v5824_v31  ;;  %v1199_v62 = vmax.f32 %v749_v48, 0.0 }
 0x155   :  { %v5926_v63 = vmax.f32 %v1192_v57, %v1224_v22  ;;  %v4721_v12 = vpop.f32.mrb[48].mxu0  ;;  %v1201_v57 = vmax.f32 %v757_v17, 0.0 }
 0x156   :  { %v869_v3 = vadd.f32 %v4721_v12, %v5845_v40  ;;  %v860_v4 = vpop.f32.mrb[49].mxu0  ;;  %v1200_v7 = vmax.f32 %v752_v55, 0.0 }
 0x157   :  { %v861_v9 = vadd.f32 %v5845_v40, %v860_v4  ;;  %v4722_v23 = vpop.f32.mrb[50].mxu0 }
 0x158   :  { %v1229_v16 = vmax.f32 %v869_v3, 0.0  ;;  %v872_v5 = vadd.f32 %v4722_v23, %v5845_v40  ;;  %v863_v24 = vpop.f32.mrb[51].mxu0  ;;  %v1202_v3 = vmax.f32 %v760_v51, 0.0  ;;  %v773_v23 = vadd.f32 %v5826_v32, %v5845_v40 }
 0x159   :  { %v1227_v6 = vmax.f32 %v861_v9, 0.0  ;;  %v864_v41 = vadd.f32 %v5845_v40, %v863_v24 }
 0x15a   :  { %v5936_v26 = vmax.f32 %v1197_v13, %v1229_v16  ;;  %v1230_v43 = vmax.f32 %v872_v5, 0.0  ;;  %v765_v16 = vadd.f32 %v5845_v40, %v5828_v33 }
 0x15b   :  { %v5938_v45 = vmax.f32 %v1195_v21, %v1227_v6  ;;  %v1228_v27 = vmax.f32 %v864_v41, 0.0  ;;  %v776_v21 = vadd.f32 %v5830_v34, %v5845_v40 }
 0x15c   :  { %v5942_v10 = vmax.f32 %v1198_v42, %v1230_v43  ;;  %v768_v42 = vadd.f32 %v5845_v40, %v5832_v35  ;;  %v1203_v48 = vmax.f32 %v765_v16, 0.0 }
 0x15d   :  { %v5946_v49 = vmax.f32 %v1196_v44, %v1228_v27  ;;  %v4725_v18 = vpop.f32.mrb[52].mxu0  ;;  %v1205_v44 = vmax.f32 %v773_v23, 0.0 }
 0x15e   :  { %v885_v53 = vadd.f32 %v4725_v18, %v5845_v40  ;;  %v876_v54 = vpop.f32.mrb[53].mxu0  ;;  %v1204_v55 = vmax.f32 %v768_v42, 0.0 }
 0x15f   :  { %v877_v56 = vadd.f32 %v5845_v40, %v876_v54  ;;  %v4726_v28 = vpop.f32.mrb[54].mxu0 }
 0x160   :  { %v1233_v22 = vmax.f32 %v885_v53, 0.0  ;;  %v888_v11 = vadd.f32 %v4726_v28, %v5845_v40  ;;  %v879_v29 = vpop.f32.mrb[55].mxu0  ;;  %v1206_v53 = vmax.f32 %v776_v21, 0.0  ;;  %v789_v28 = vadd.f32 %v5834_v36, %v5845_v40 }
 0x161   :  { %v1231_v12 = vmax.f32 %v877_v56, 0.0  ;;  %v880_v1 = vadd.f32 %v5845_v40, %v879_v29 }
 0x162   :  { %v5956_v30 = vmax.f32 %v1201_v57, %v1233_v22  ;;  %v1234_v4 = vmax.f32 %v888_v11, 0.0  ;;  %v781_v22 = vadd.f32 %v5845_v40, %v5836_v37 }
 0x163   :  { %v5958_v9 = vmax.f32 %v1199_v62, %v1231_v12  ;;  %v1232_v31 = vmax.f32 %v880_v1, 0.0  ;;  %v792_v62 = vadd.f32 %v5838_v38, %v5845_v40 }
 0x164   :  { %6834 = vst [vmem:[#allocation2_spill] sm:$0xff] %v5956_v30  ;;  %v5962_v13 = vmax.f32 %v1202_v3, %v1234_v4  ;;  %v784_v3 = vadd.f32 %v5845_v40, %v5840_v39  ;;  %v1207_v16 = vmax.f32 %v781_v22, 0.0 }
 0x165   :  { %6835 = vst [vmem:[#allocation3_spill] sm:$0xff] %v5958_v9  ;;  %v5966_v5 = vmax.f32 %v1200_v7, %v1232_v31  ;;  %v4729_v24 = vpop.f32.mrb[56].mxu0  ;;  %v1209_v7 = vmax.f32 %v789_v28, 0.0 }
 0x166   :  { %6836 = vst [vmem:[#allocation4_spill] sm:$0xff] %v5962_v13  ;;  %v901_v6 = vadd.f32 %v4729_v24, %v5845_v40  ;;  %v892_v41 = vpop.f32.mrb[57].mxu0  ;;  %v1208_v42 = vmax.f32 %v784_v3, 0.0 }
 0x167   :  { %6837 = vst [vmem:[#allocation5_spill] sm:$0xff] %v5966_v5  ;;  %v893_v43 = vadd.f32 %v5845_v40, %v892_v41  ;;  %v4730_v32 = vpop.f32.mrb[58].mxu0 }
 0x168   :  { %v1237_v27 = vmax.f32 %v901_v6, 0.0  ;;  %v904_v17 = vadd.f32 %v4730_v32, %v5845_v40  ;;  %v895_v33 = vpop.f32.mrb[59].mxu0  ;;  %v1210_v6 = vmax.f32 %v792_v62, 0.0 }
 0x169   :  { %v1235_v18 = vmax.f32 %v893_v43, 0.0  ;;  %v896_v51 = vadd.f32 %v5845_v40, %v895_v33 }
 0x16a   :  { %v5976_v34 = vmax.f32 %v1205_v44, %v1237_v27  ;;  %v1238_v54 = vmax.f32 %v904_v17, 0.0 }
 0x16b   :  { %v5978_v56 = vmax.f32 %v1203_v48, %v1235_v18  ;;  %v1236_v35 = vmax.f32 %v896_v51, 0.0 }
 0x16c   :  { %6838 = vst [vmem:[#allocation6_spill] sm:$0xff] %v5976_v34  ;;  %v5982_v57 = vmax.f32 %v1206_v53, %v1238_v54 }
 0x16d   :  { %6839 = vst [vmem:[#allocation7_spill] sm:$0xff] %v5978_v56  ;;  %v5986_v11 = vmax.f32 %v1204_v55, %v1236_v35  ;;  %v4733_v29 = vpop.f32.mrb[60].mxu0  ;;  %v5320_v55 = vld [vmem:[%s6819_s3 + $0x4] ss:$8 sps:$4 sm:$0xff]  }
 0x16e   :  { %6840 = vst [vmem:[#allocation8_spill] sm:$0xff] %v5982_v57  ;;  %v917_v12 = vadd.f32 %v4733_v29, %v5845_v40  ;;  %v908_v1 = vpop.f32.mrb[61].mxu0  ;;  %1739 = vmatprep.mubr.bf16.mxu1 %v5320_v55 }
 0x16f   :  { %6841 = vst [vmem:[#allocation9_spill] sm:$0xff] %v5986_v11  ;;  %v909_v4 = vadd.f32 %v5845_v40, %v908_v1  ;;  %v4734_v36 = vpop.f32.mrb[62].mxu0 }
 0x170   :  { %v1241_v31 = vmax.f32 %v917_v12, 0.0  ;;  %v920_v23 = vadd.f32 %v4734_v36, %v5845_v40  ;;  %v911_v37 = vpop.f32.mrb[63].mxu0 }
 0x171   :  { %v1239_v24 = vmax.f32 %v909_v4, 0.0  ;;  %v912_v21 = vadd.f32 %v5845_v40, %v911_v37 }
 0x172   :  { %v5996_v38 = vmax.f32 %v1209_v7, %v1241_v31  ;;  %v1242_v41 = vmax.f32 %v920_v23, 0.0 }
 0x173   :  { %v5998_v43 = vmax.f32 %v1207_v16, %v1239_v24  ;;  %v1240_v39 = vmax.f32 %v912_v21, 0.0 }
 0x174   :  { %6842 = vst [vmem:[#allocation10_spill] sm:$0xff] %v5996_v38  ;;  %v6000_v32 = vmax.f32 %v1210_v6, %v1242_v41 }
 0x175   :  { %6843 = vst [vmem:[#allocation11_spill] sm:$0xff] %v5998_v43  ;;  %v6002_v44 = vmax.f32 %v1208_v42, %v1240_v39  ;;  %v4737_v27 = vpop.f32.mrb[64].mxu0 }
 0x176   :  { %6844 = vst [vmem:[#allocation12_spill] sm:$0xff] %v6000_v32  ;;  %v924_v17 = vpop.f32.mrb[65].mxu0  ;;  %v933_v32 = vadd.f32 %v4737_v27, %v5845_v40 }
 0x177   :  { %6845 = vst [vmem:[#allocation13_spill] sm:$0xff] %v6002_v44  ;;  %v4738_v33 = vpop.f32.mrb[66].mxu0  ;;  %v925_v43 = vadd.f32 %v5845_v40, %v924_v17 }
 0x178   :  { %v927_v48 = vpop.f32.mrb[67].mxu0  ;;  %v936_v11 = vadd.f32 %v4738_v33, %v5845_v40 }
 0x179   :  { %v928_v34 = vadd.f32 %v5845_v40, %v927_v48  ;;  %v1243_v13 = vmax.f32 %v925_v43, 0.0 }
 0x17d   :  { %v4741_v18 = vpop.f32.mrb[68].mxu0 }
 0x17e   :  { %v940_v51 = vpop.f32.mrb[69].mxu0  ;;  %v949_v48 = vadd.f32 %v4741_v18, %v5845_v40 }
 0x17f   :  { %v4742_v53 = vpop.f32.mrb[70].mxu0 }
 0x180   :  { %v943_v54 = vpop.f32.mrb[71].mxu0 }
 0x185   :  { %v6007_v35 = vpop.f32.mrb[72].mxu0 }
 0x186   :  { %v6009_v28 = vpop.f32.mrb[73].mxu0 }
 0x187   :  { %v6011_v22 = vpop.f32.mrb[74].mxu0 }
 0x188   :  { %v6013_v29 = vpop.f32.mrb[75].mxu0 }
 0x18d   :  { %v6015_v62 = vpop.f32.mrb[76].mxu0 }
 0x18e   :  { %v6017_v12 = vpop.f32.mrb[77].mxu0 }
 0x18f   :  { %v6019_v1 = vpop.f32.mrb[78].mxu0 }
 0x190   :  { %v6021_v3 = vpop.f32.mrb[79].mxu0 }
 0x195   :  { %v6023_v4 = vpop.f32.mrb[80].mxu0 }
 0x196   :  { %v6025_v36 = vpop.f32.mrb[81].mxu0 }
 0x197   :  { %v6027_v7 = vpop.f32.mrb[82].mxu0 }
 0x198   :  { %v6029_v31 = vpop.f32.mrb[83].mxu0 }
 0x19d   :  { %v6031_v23 = vpop.f32.mrb[84].mxu0 }
 0x19e   :  { %v6033_v37 = vpop.f32.mrb[85].mxu0 }
 0x19f   :  { %v6035_v16 = vpop.f32.mrb[86].mxu0 }
 0x1a0   :  { %v6037_v24 = vpop.f32.mrb[87].mxu0 }
 0x1a5   :  { %v6039_v21 = vpop.f32.mrb[88].mxu0 }
 0x1a6   :  { %6846 = vst [vmem:[#allocation14_spill] sm:$0xff] %v6039_v21  ;;  %v6041_v6 = vpop.f32.mrb[89].mxu0 }
 0x1a7   :  { %6847 = vst [vmem:[#allocation15_spill] sm:$0xff] %v6041_v6  ;;  %v6043_v41 = vpop.f32.mrb[90].mxu0  ;;  %v1244_v6 = vmax.f32 %v928_v34, 0.0 }
 0x1a8   :  { %6848 = vst [vmem:[#allocation16_spill] sm:$0xff] %v6043_v41  ;;  %v6045_v42 = vpop.f32.mrb[91].mxu0  ;;  %v1246_v41 = vmax.f32 %v936_v11, 0.0 }
 0x1a9   :  { %6849 = vst [vmem:[#allocation17_spill] sm:$0xff] %v6045_v42 }
 0x1ad   :  { %v6047_v39 = vpop.f32.mrb[92].mxu0 }
 0x1ae   :  { %6850 = vst [vmem:[#allocation18_spill] sm:$0xff] %v6047_v39  ;;  %v6049_v55 = vpop.f32.mrb[93].mxu0 }
 0x1af   :  { %6851 = vst [vmem:[#allocation19_spill] sm:$0xff] %v6049_v55  ;;  %v6051_v46 = vpop.f32.mrb[94].mxu0  ;;  %v1245_v55 = vmax.f32 %v933_v32, 0.0 }
 0x1b0   :  { %6852 = vst [vmem:[#allocation20_spill] sm:$0xff] %v6051_v46  ;;  %v6053_v44 = vpop.f32.mrb[95].mxu0 }
 0x1b1   :  { %6853 = vst [vmem:[#allocation21_spill] sm:$0xff] %v6053_v44 }
 0x1b5   :  { %v4769_v38 = vpop.f32.mrb[96].mxu0 }
 0x1b6   :  { %v1061_v57 = vadd.f32 %v4769_v38, %v5845_v40  ;;  %v1052_v56 = vpop.f32.mrb[97].mxu0 }
 0x1b7   :  { %v1053_v39 = vadd.f32 %v5845_v40, %v1052_v56  ;;  %v4770_v5 = vpop.f32.mrb[98].mxu0 }
 0x1b8   :  { %v1277_v42 = vmax.f32 %v1061_v57, 0.0  ;;  %v1064_v46 = vadd.f32 %v4770_v5, %v5845_v40  ;;  %v1055_v44 = vpop.f32.mrb[99].mxu0  ;;  %v941_v57 = vadd.f32 %v5845_v40, %v940_v51 }
 0x1b9   :  { %v1275_v27 = vmax.f32 %v1053_v39, 0.0  ;;  %v1056_v17 = vadd.f32 %v5845_v40, %v1055_v44  ;;  %v952_v39 = vadd.f32 %v4742_v53, %v5845_v40 }
 0x1ba   :  { %v1341_v9 = vmax.f32 %v1245_v55, %v1277_v42  ;;  %v1278_v33 = vmax.f32 %v1064_v46, 0.0 }
 0x1bb   :  { %v1339_v38 = vmax.f32 %v1243_v13, %v1275_v27  ;;  %v1276_v30 = vmax.f32 %v1056_v17, 0.0  ;;  %v944_v13 = vadd.f32 %v5845_v40, %v943_v54  ;;  %v1250_v42 = vmax.f32 %v952_v39, 0.0 }
 0x1bc   :  { %v1373_v56 = vmax.f32 %v5855_v58, %v1341_v9  ;;  %v1342_v21 = vmax.f32 %v1246_v41, %v1278_v33  ;;  %v1249_v9 = vmax.f32 %v949_v48, 0.0  ;;  %v1247_v41 = vmax.f32 %v941_v57, 0.0 }
 0x1bd   :  { %v1340_v32 = vmax.f32 %v1244_v6, %v1276_v30  ;;  %v4773_v5 = vpop.f32.mrb[100].mxu0  ;;  %v1371_v43 = vmax.f32 %v5857_v61, %v1339_v38  ;;  %v1248_v54 = vmax.f32 %v944_v13, 0.0  ;;  %v968_v39 = vadd.f32 %v6011_v22, %v5845_v40 }
 0x1be   :  { %v1374_v11 = vmax.f32 %v5861_v0, %v1342_v21  ;;  %v1077_v46 = vadd.f32 %v4773_v5, %v5845_v40  ;;  %v1068_v34 = vpop.f32.mrb[101].mxu0 }
 0x1bf   :  { %v1069_v44 = vadd.f32 %v5845_v40, %v1068_v34  ;;  %v4774_v18 = vpop.f32.mrb[102].mxu0  ;;  %v1372_v58 = vmax.f32 %v5865_v2, %v1340_v32  ;;  %v965_v2 = vadd.f32 %v6007_v35, %v5845_v40  ;;  %v6854_v32 = vmov 0  }
 0x1c0   :  { %v1281_v51 = vmax.f32 %v1077_v46, 0.0  ;;  %v1080_v30 = vadd.f32 %v4774_v18, %v5845_v40  ;;  %v1071_v6 = vpop.f32.mrb[103].mxu0  ;;  %v1452_v61 = vpack.c.bf16 %v1374_v11, %v1373_v56  ;;  %v957_v56 = vadd.f32 %v5845_v40, %v6009_v28 }
 0x1c1   :  { %v1279_v53 = vmax.f32 %v1069_v44, 0.0  ;;  %v1072_v0 = vadd.f32 %v5845_v40, %v1071_v6  ;;  %v1451_v21 = vpack.c.bf16 %v1372_v58, %v1371_v43 }
 0x1c2   :  { %v1345_v55 = vmax.f32 %v1249_v9, %v1281_v51  ;;  %v1282_v27 = vmax.f32 %v1080_v30, 0.0  ;;  %v1251_v22 = vmax.f32 %v957_v56, 0.0 }
 0x1c3   :  { %v1343_v17 = vmax.f32 %v1247_v41, %v1279_v53  ;;  %v1280_v33 = vmax.f32 %v1072_v0, 0.0  ;;  %1708 = vmatpush1.bf16.msra.mxu1 %v1451_v21 }
 0x1c4   :  { %v1377_v38 = vmax.f32 %v5875_v8, %v1345_v55  ;;  %v1346_v48 = vmax.f32 %v1250_v42, %v1282_v27  ;;  %1709 = vmatprep.subr.bf16.mxu1 %v6854_v32  ;;  %v960_v8 = vadd.f32 %v5845_v40, %v6013_v29  ;;  %v1254_v29 = vmax.f32 %v968_v39, 0.0 }
 0x1c5   :  { %v1375_v57 = vmax.f32 %v5878_v47, %v1343_v17  ;;  %v1344_v5 = vmax.f32 %v1248_v54, %v1280_v33  ;;  %v4777_v43 = vpop.f32.mrb[104].mxu0  ;;  %v1253_v47 = vmax.f32 %v965_v2, 0.0  ;;  %v973_v55 = vadd.f32 %v5845_v40, %v6017_v12 }
 0x1c6   :  { %v1378_v11 = vmax.f32 %v5882_v50, %v1346_v48  ;;  %v1093_v46 = vadd.f32 %v4777_v43, %v5845_v40  ;;  %v1084_v35 = vpop.f32.mrb[105].mxu0  ;;  %v1252_v41 = vmax.f32 %v960_v8, 0.0  ;;  %v984_v33 = vadd.f32 %v6019_v1, %v5845_v40 }
 0x1c7   :  { %v1376_v34 = vmax.f32 %v5886_v52, %v1344_v5  ;;  %v1085_v13 = vadd.f32 %v5845_v40, %v1084_v35  ;;  %v4778_v28 = vpop.f32.mrb[106].mxu0  ;;  %1710 = vmatpush1.bf16.msra.mxu1 %v1452_v61  ;;  %v981_v61 = vadd.f32 %v6015_v62, %v5845_v40  ;;  %v1255_v1 = vmax.f32 %v973_v55, 0.0 }
 0x1c8   :  { %v1285_v44 = vmax.f32 %v1093_v46, 0.0  ;;  %v1096_v18 = vadd.f32 %v4778_v28, %v5845_v40  ;;  %v1087_v58 = vpop.f32.mrb[107].mxu0  ;;  %1711 = vmatprep.subr.bf16.mxu1 %v6854_v32  ;;  %v1454_v50 = vpack.c.bf16 %v1378_v11, %v1377_v38  ;;  %v997_v28 = vadd.f32 %v6023_v4, %v5845_v40 }
 0x1c9   :  { %v1283_v9 = vmax.f32 %v1085_v13, 0.0  ;;  %v1088_v51 = vadd.f32 %v5845_v40, %v1087_v58  ;;  %v1453_v30 = vpack.c.bf16 %v1376_v34, %v1375_v57 }
 0x1ca   :  { %v1349_v6 = vmax.f32 %v1253_v47, %v1285_v44  ;;  %v1286_v52 = vmax.f32 %v1096_v18, 0.0  ;;  %v989_v18 = vadd.f32 %v5845_v40, %v6025_v36 }
 0x1cb   :  { %v1347_v53 = vmax.f32 %v1251_v22, %v1283_v9  ;;  %v1284_v0 = vmax.f32 %v1088_v51, 0.0  ;;  %1712 = vmatpush1.bf16.msra.mxu1 %v1453_v30  ;;  %v1000_v9 = vadd.f32 %v6027_v7, %v5845_v40 }
 0x1cc   :  { %v1381_v21 = vmax.f32 %v5896_v14, %v1349_v6  ;;  %v1350_v42 = vmax.f32 %v1254_v29, %v1286_v52  ;;  %1713 = vmatprep.subr.bf16.mxu1 %v6854_v32  ;;  %v976_v14 = vadd.f32 %v5845_v40, %v6021_v3  ;;  %v1258_v3 = vmax.f32 %v984_v33, 0.0 }
 0x1cd   :  { %v1379_v27 = vmax.f32 %v5898_v15, %v1347_v53  ;;  %v1348_v54 = vmax.f32 %v1252_v41, %v1284_v0  ;;  %v4781_v17 = vpop.f32.mrb[108].mxu0  ;;  %v1257_v15 = vmax.f32 %v981_v61, 0.0  ;;  %v1259_v7 = vmax.f32 %v989_v18, 0.0  ;;  %v6857_v18 = vld [vmem:[#allocation15_spill] sm:$0xff] }
 0x1ce   :  { %v1382_v2 = vmax.f32 %v5902_v19, %v1350_v42  ;;  %v1109_v38 = vadd.f32 %v4781_v17, %v5845_v40  ;;  %v1100_v62 = vpop.f32.mrb[109].mxu0  ;;  %v1256_v8 = vmax.f32 %v976_v14, 0.0  ;;  %v1013_v17 = vadd.f32 %v6031_v23, %v5845_v40 }
 0x1cf   :  { %v1380_v48 = vmax.f32 %v5906_v25, %v1348_v54  ;;  %v1101_v56 = vadd.f32 %v5845_v40, %v1100_v62  ;;  %v4782_v12 = vpop.f32.mrb[110].mxu0  ;;  %1714 = vmatpush1.bf16.msra.mxu1 %v1454_v50 }
 0x1d0   :  { %v1289_v57 = vmax.f32 %v1109_v38, 0.0  ;;  %v1112_v5 = vadd.f32 %v4782_v12, %v5845_v40  ;;  %v1103_v43 = vpop.f32.mrb[111].mxu0  ;;  %1715 = vmatprep.subr.bf16.mxu1 %v6854_v32  ;;  %v1456_v19 = vpack.c.bf16 %v1382_v2, %v1381_v21  ;;  %v1005_v38 = vadd.f32 %v5845_v40, %v6033_v37 }
 0x1d1   :  { %v1287_v39 = vmax.f32 %v1101_v56, 0.0  ;;  %v1104_v11 = vadd.f32 %v5845_v40, %v1103_v43  ;;  %v1455_v46 = vpack.c.bf16 %v1380_v48, %v1379_v27  ;;  %v1016_v56 = vadd.f32 %v6035_v16, %v5845_v40 }
 0x1d2   :  { %v1353_v35 = vmax.f32 %v1257_v15, %v1289_v57  ;;  %v1290_v25 = vmax.f32 %v1112_v5, 0.0  ;;  %v1263_v16 = vmax.f32 %v1005_v38, 0.0 }
 0x1d3   :  { %v1351_v34 = vmax.f32 %v1255_v1, %v1287_v39  ;;  %v1288_v13 = vmax.f32 %v1104_v11, 0.0  ;;  %1716 = vmatpush1.bf16.msra.mxu1 %v1455_v46 }
 0x1d4   :  { %v1385_v47 = vmax.f32 %v5916_v20, %v1353_v35  ;;  %v1354_v44 = vmax.f32 %v1258_v3, %v1290_v25  ;;  %1717 = vmatprep.subr.bf16.mxu1 %v6854_v32  ;;  %v992_v20 = vadd.f32 %v5845_v40, %v6029_v31  ;;  %v1262_v31 = vmax.f32 %v1000_v9, 0.0 }
 0x1d5   :  { %v1383_v58 = vmax.f32 %v5918_v59, %v1351_v34  ;;  %v1352_v50 = vmax.f32 %v1256_v8, %v1288_v13  ;;  %v4785_v22 = vpop.f32.mrb[112].mxu0  ;;  %v1261_v59 = vmax.f32 %v997_v28, 0.0  ;;  %v6855_v34 = vld [vmem:[#allocation14_spill] sm:$0xff] }
 0x1d6   :  { %v1386_v51 = vmax.f32 %v5922_v60, %v1354_v44  ;;  %v1125_v30 = vadd.f32 %v4785_v22, %v5845_v40  ;;  %v1116_v4 = vpop.f32.mrb[113].mxu0  ;;  %v1260_v55 = vmax.f32 %v992_v20, 0.0  ;;  %v1029_v13 = vadd.f32 %v6855_v34, %v5845_v40  ;;  %v6856_v28 = vld [vmem:[#allocation2_spill] sm:$0xff]  ;;  %v6860_v20 = vld [vmem:[#allocation4_spill] sm:$0xff] }
 0x1d7   :  { %v1384_v29 = vmax.f32 %v5926_v63, %v1352_v50  ;;  %v1117_v6 = vadd.f32 %v5845_v40, %v1116_v4  ;;  %v4786_v36 = vpop.f32.mrb[114].mxu0  ;;  %1718 = vmatpush1.bf16.msra.mxu1 %v1456_v19  ;;  %v6858_v50 = vld [vmem:[#allocation3_spill] sm:$0xff] }
 0x1d8   :  { %v1293_v52 = vmax.f32 %v1125_v30, 0.0  ;;  %v1128_v41 = vadd.f32 %v4786_v36, %v5845_v40  ;;  %v1119_v53 = vpop.f32.mrb[115].mxu0  ;;  %1719 = vmatprep.subr.bf16.mxu1 %v6854_v32  ;;  %v1458_v60 = vpack.c.bf16 %v1386_v51, %v1385_v47  ;;  %v6859_v30 = vld [vmem:[#allocation16_spill] sm:$0xff] }
 0x1d9   :  { %v1291_v0 = vmax.f32 %v1117_v6, 0.0  ;;  %v1120_v61 = vadd.f32 %v5845_v40, %v1119_v53  ;;  %v1457_v21 = vpack.c.bf16 %v1384_v29, %v1383_v58  ;;  %v1021_v58 = vadd.f32 %v5845_v40, %v6857_v18 }
 0x1da   :  { %v1357_v42 = vmax.f32 %v1261_v59, %v1293_v52  ;;  %v1294_v63 = vmax.f32 %v1128_v41, 0.0  ;;  %v1032_v4 = vadd.f32 %v6859_v30, %v5845_v40  ;;  %v6861_v59 = vld [vmem:[#allocation17_spill] sm:$0xff] }
 0x1db   :  { %v1355_v27 = vmax.f32 %v1259_v7, %v1291_v0  ;;  %v1292_v54 = vmax.f32 %v1120_v61, 0.0  ;;  %1720 = vmatpush1.bf16.msra.mxu1 %v1457_v21  ;;  %v1024_v52 = vadd.f32 %v5845_v40, %v6861_v59  ;;  %v6862_v41 = vld [vmem:[#allocation5_spill] sm:$0xff]  ;;  %v1269_v0 = vmax.f32 %v1029_v13, 0.0  ;;  %v6872_v59 = vld [vmem:[#allocation11_spill] sm:$0xff] }
 0x1dc   :  { %v1389_v33 = vmax.f32 %v5936_v26, %v1357_v42  ;;  %v1358_v2 = vmax.f32 %v1262_v31, %v1294_v63  ;;  %1721 = vmatprep.subr.bf16.mxu1 %v6854_v32  ;;  %v1008_v26 = vadd.f32 %v5845_v40, %v6037_v24  ;;  %v1266_v24 = vmax.f32 %v1016_v56, 0.0 }
 0x1dd   :  { %v1387_v62 = vmax.f32 %v5938_v45, %v1355_v27  ;;  %v1356_v14 = vmax.f32 %v1260_v55, %v1292_v54  ;;  %v4789_v48 = vpop.f32.mrb[116].mxu0  ;;  %v1265_v45 = vmax.f32 %v1013_v17, 0.0  ;;  %v1267_v63 = vmax.f32 %v1021_v58, 0.0 }
 0x1de   :  { %v1390_v12 = vmax.f32 %v5942_v10, %v1358_v2  ;;  %v1141_v15 = vadd.f32 %v4789_v48, %v5845_v40  ;;  %v1132_v23 = vpop.f32.mrb[117].mxu0  ;;  %v1264_v35 = vmax.f32 %v1008_v26, 0.0  ;;  %v1270_v17 = vmax.f32 %v1032_v4, 0.0  ;;  %v6863_v48 = vld [vmem:[#allocation18_spill] sm:$0xff]  ;;  %v6865_v26 = vld [vmem:[#allocation19_spill] sm:$0xff] }
 0x1df   :  { %v1388_v57 = vmax.f32 %v5946_v49, %v1356_v14  ;;  %v1133_v5 = vadd.f32 %v5845_v40, %v1132_v23  ;;  %v4790_v37 = vpop.f32.mrb[118].mxu0  ;;  %1722 = vmatpush1.bf16.msra.mxu1 %v1458_v60  ;;  %v1268_v38 = vmax.f32 %v1024_v52, 0.0  ;;  %v1045_v56 = vadd.f32 %v6863_v48, %v5845_v40  ;;  %v5339_v48 = vld [vmem:[%s6819_s3 + $0x74] ss:$8 sps:$4 sm:$0xff]  }
 0x1e0   :  { %v1297_v43 = vmax.f32 %v1141_v15, 0.0  ;;  %v1144_v19 = vadd.f32 %v4790_v37, %v5845_v40  ;;  %v1135_v1 = vpop.f32.mrb[119].mxu0  ;;  %1723 = vmatprep.subr.bf16.mxu1 %v6854_v32  ;;  %v1460_v10 = vpack.c.bf16 %v1390_v12, %v1389_v33  ;;  %v6864_v12 = vld [vmem:[#allocation6_spill] sm:$0xff] }
 0x1e1   :  { %v1295_v39 = vmax.f32 %v1133_v5, 0.0  ;;  %v1136_v11 = vadd.f32 %v5845_v40, %v1135_v1  ;;  %v1459_v46 = vpack.c.bf16 %v1388_v57, %v1387_v62  ;;  %v1037_v57 = vadd.f32 %v5845_v40, %v6865_v26  ;;  %v6866_v5 = vld [vmem:[#allocation7_spill] sm:$0xff]  ;;  %v5347_v26 = vld [vmem:[%s6819_s3 + $0x90] ss:$8 sps:$4 sm:$0xff]  }
 0x1e2   :  { %v1361_v3 = vmax.f32 %v1265_v45, %v1297_v43  ;;  %v1298_v49 = vmax.f32 %v1144_v19, 0.0  ;;  %v6867_v19 = vld [vmem:[#allocation20_spill] sm:$0xff]  ;;  %v1273_v34 = vmax.f32 %v1045_v56, 0.0 }
 0x1e3   :  { %v1359_v25 = vmax.f32 %v1263_v16, %v1295_v39  ;;  %v1296_v8 = vmax.f32 %v1136_v11, 0.0  ;;  %1724 = vmatpush1.bf16.msra.mxu1 %v1459_v46  ;;  %v1048_v1 = vadd.f32 %v6867_v19, %v5845_v40  ;;  %v5486_v46 = vld [vmem:[%s6818_s2] ss:$0 sm:$0xff]  ;;  %v5341_v56 = vld [vmem:[%s6819_s3 + $0x70] ss:$8 sps:$4 sm:$0xff]  }
 0x1e4   :  { %v1393_v47 = vmax.f32 %v6856_v28, %v1361_v3  ;;  %v1362_v44 = vmax.f32 %v1266_v24, %v1298_v49  ;;  %1725 = vmatprep.subr.bf16.mxu1 %v6854_v32  ;;  %v6869_v24 = vld [vmem:[#allocation21_spill] sm:$0xff]  ;;  %v5356_v19 = vld [vmem:[%s6819_s3 + $0xc0] ss:$8 sps:$4 sm:$0xff]  }
 0x1e5   :  { %v1391_v22 = vmax.f32 %v6858_v50, %v1359_v25  ;;  %v1360_v9 = vmax.f32 %v1264_v35, %v1296_v8  ;;  %v4793_v51 = vpop.f32.mrb[120].mxu0  ;;  %v1040_v3 = vadd.f32 %v5486_v46, %v6869_v24  ;;  %v6870_v49 = vld [vmem:[#allocation9_spill] sm:$0xff] }
 0x1e6   :  { %v1394_v29 = vmax.f32 %v6860_v20, %v1362_v44  ;;  %v1157_v6 = vadd.f32 %v4793_v51, %v5845_v40  ;;  %v1148_v36 = vpop.f32.mrb[121].mxu0  ;;  %v5387_v24 = vld [vmem:[%s6820_s4 + $0x58] sm:$0xff]  }
 0x1e7   :  { %v1392_v53 = vmax.f32 %v6862_v41, %v1360_v9  ;;  %v1149_v60 = vadd.f32 %v5845_v40, %v1148_v36  ;;  %v4794_v7 = vpop.f32.mrb[122].mxu0  ;;  %1726 = vmatpush1.bf16.msra.mxu1 %v1460_v10  ;;  %v6868_v10 = vld [vmem:[#allocation8_spill] sm:$0xff]  ;;  %v1272_v30 = vmax.f32 %v1040_v3, 0.0  ;;  %v5362_v3 = vld [vmem:[%s6819_s3 + $0xe0] ss:$8 sps:$4 sm:$0xff]  }
 0x1e8   :  { %v1301_v61 = vmax.f32 %v1157_v6, 0.0  ;;  %v1160_v21 = vadd.f32 %v4794_v7, %v5845_v40  ;;  %v1151_v31 = vpop.f32.mrb[123].mxu0  ;;  %1727 = vmatprep.subr.bf16.mxu1 %v6854_v32  ;;  %v1462_v42 = vpack.c.bf16 %v1394_v29, %v1393_v47  ;;  %v6871_v29 = vld [vmem:[#allocation10_spill] sm:$0xff]  ;;  %v6874_v7 = vld [vmem:[#allocation13_spill] sm:$0xff] }
 0x1e9   :  { %v1299_v55 = vmax.f32 %v1149_v60, 0.0  ;;  %v1152_v27 = vadd.f32 %v5845_v40, %v1151_v31  ;;  %v1461_v54 = vpack.c.bf16 %v1392_v53, %v1391_v22  ;;  %v1274_v22 = vmax.f32 %v1048_v1, 0.0  ;;  %v6873_v53 = vld [vmem:[#allocation12_spill] sm:$0xff]  ;;  %v5318_v31 = vld [vmem:[%s6819_s3] ss:$8 sps:$4 sm:$0xff]  }
 0x1ea   :  { %v1365_v33 = vmax.f32 %v1269_v0, %v1301_v61  ;;  %v1302_v2 = vmax.f32 %v1160_v21, 0.0  ;;  %v5357_v1 = vld [vmem:[%s6819_s3 + $0xd4] ss:$8 sps:$4 sm:$0xff]  }
 0x1eb   :  { %v1363_v62 = vmax.f32 %v1267_v63, %v1299_v55  ;;  %v1300_v14 = vmax.f32 %v1152_v27, 0.0  ;;  %1728 = vmatpush1.bf16.msra.mxu1 %v1461_v54  ;;  %v5323_v63 = vld [vmem:[%s6819_s3 + $0x10] ss:$8 sps:$4 sm:$0xff]   ;;  %v5324_v55 = vld [vmem:[%s6819_s3 + $0x24] ss:$8 sps:$4 sm:$0xff]  }
 0x1ec   :  { %v1397_v15 = vmax.f32 %v6864_v12, %v1365_v33  ;;  %v1366_v23 = vmax.f32 %v1270_v17, %v1302_v2  ;;  %1729 = vmatprep.subr.bf16.mxu1 %v6854_v32  ;;  %v5327_v27 = vld [vmem:[%s6819_s3 + $0x34] ss:$8 sps:$4 sm:$0xff]   ;;  %v5329_v54 = vld [vmem:[%s6819_s3 + $0x30] ss:$8 sps:$4 sm:$0xff]   ;;  %v5330_v17 = vld [vmem:[%s6819_s3 + $0x44] ss:$8 sps:$4 sm:$0xff]  }
 0x1ed   :  { %v1395_v37 = vmax.f32 %v6866_v5, %v1363_v62  ;;  %v1364_v45 = vmax.f32 %v1268_v38, %v1300_v14  ;;  %v4797_v43 = vpop.f32.mrb[124].mxu0  ;;  %v5332_v33 = vld [vmem:[%s6819_s3 + $0x40] ss:$8 sps:$4 sm:$0xff]   ;;  %v5333_v2 = vld [vmem:[%s6819_s3 + $0x54] ss:$8 sps:$4 sm:$0xff]  }
 0x1ee   :  { %v1398_v16 = vmax.f32 %v6868_v10, %v1366_v23  ;;  %v1173_v39 = vadd.f32 %v4797_v43, %v5845_v40  ;;  %v1164_v11 = vpop.f32.mrb[125].mxu0  ;;  %v1271_v40 = vmax.f32 %v1037_v57, 0.0  ;;  %v5335_v38 = vld [vmem:[%s6819_s3 + $0x50] ss:$8 sps:$4 sm:$0xff]   ;;  %v5336_v62 = vld [vmem:[%s6819_s3 + $0x64] ss:$8 sps:$4 sm:$0xff]  }
 0x1ef   :  { %v1396_v35 = vmax.f32 %v6870_v49, %v1364_v45  ;;  %v1165_v25 = vadd.f32 %v5486_v46, %v1164_v11  ;;  %v4798_v8 = vpop.f32.mrb[126].mxu0  ;;  %1730 = vmatpush1.bf16.msra.mxu1 %v1462_v42  ;;  %v5321_v42 = vld [vmem:[%s6819_s3 + $0x14] ss:$8 sps:$4 sm:$0xff]   ;;  %v5338_v14 = vld [vmem:[%s6819_s3 + $0x60] ss:$8 sps:$4 sm:$0xff]  }
 0x1f0   :  { %v1305_v13 = vmax.f32 %v1173_v39, 0.0  ;;  %v1176_v28 = vadd.f32 %v5486_v46, %v4798_v8  ;;  %v1167_v47 = vpop.f32.mrb[127].mxu0  ;;  %1731 = vmatprep.subr.bf16.mxu1 %v6854_v32  ;;  %v1464_v44 = vpack.c.bf16 %v1398_v16, %v1397_v15  ;;  %v5342_v12 = vld [vmem:[%s6819_s3 + $0x84] ss:$8 sps:$4 sm:$0xff]   ;;  %v5344_v15 = vld [vmem:[%s6819_s3 + $0x80] ss:$8 sps:$4 sm:$0xff]  }
 0x1f1   :  { %v1303_v18 = vmax.f32 %v1165_v25, 0.0  ;;  %v1168_v58 = vadd.f32 %v5486_v46, %v1167_v47  ;;  %v1463_v50 = vpack.c.bf16 %v1396_v35, %v1395_v37  ;;  %v5345_v23 = vld [vmem:[%s6819_s3 + $0x94] ss:$8 sps:$4 sm:$0xff]   ;;  %v5348_v57 = vld [vmem:[%s6819_s3 + $0xa4] ss:$8 sps:$4 sm:$0xff]  }
 0x1f2   :  { %v1369_v9 = vmax.f32 %v1273_v34, %v1305_v13  ;;  %v1306_v51 = vmax.f32 %v1176_v28, 0.0  ;;  %v5350_v5 = vld [vmem:[%s6819_s3 + $0xa0] ss:$8 sps:$4 sm:$0xff]   ;;  %v5351_v37 = vld [vmem:[%s6819_s3 + $0xb4] ss:$8 sps:$4 sm:$0xff]  }
 0x1f3   :  { %v1367_v4 = vmax.f32 %v1271_v40, %v1303_v18  ;;  %v1304_v20 = vmax.f32 %v1168_v58, 0.0  ;;  %1732 = vmatpush1.bf16.msra.mxu1 %v1463_v50  ;;  %v5353_v45 = vld [vmem:[%s6819_s3 + $0xb0] ss:$8 sps:$4 sm:$0xff]   ;;  %v5354_v43 = vld [vmem:[%s6819_s3 + $0xc4] ss:$8 sps:$4 sm:$0xff]  }
 0x1f4   :  { %v1401_v6 = vmax.f32 %v6871_v29, %v1369_v9  ;;  %v1370_v36 = vmax.f32 %v1274_v22, %v1306_v51  ;;  %1733 = vmatprep.subr.bf16.mxu1 %v6854_v32  ;;  %v5381_v10 = vld [vmem:[%s6820_s4 + $0x40] sm:$0xff]   ;;  %v5382_v16 = vld [vmem:[%s6820_s4 + $0x48] sm:$0xff]   ;;  %v5359_v39 = vld [vmem:[%s6819_s3 + $0xd0] ss:$8 sps:$4 sm:$0xff]  }
 0x1f5   :  { %v1399_v52 = vmax.f32 %v6872_v59, %v1367_v4  ;;  %v1368_v41 = vmax.f32 %v1272_v30, %v1304_v20  ;;  %v5360_v11 = vld [vmem:[%s6819_s3 + $0xe4] ss:$8 sps:$4 sm:$0xff]   ;;  %v5386_v46 = vld [vmem:[%s6820_s4 + $0x50] sm:$0xff]   ;;  %v5397_v28 = vld [vmem:[%s6820_s4 + $0x78] sm:$0xff]  }
 0x1f6   :  { %v1402_v60 = vmax.f32 %v6873_v53, %v1370_v36  ;;  %v5363_v49 = vld [vmem:[%s6819_s3 + $0xf4] ss:$8 sps:$4 sm:$0xff]   ;;  %v5391_v35 = vld [vmem:[%s6820_s4 + $0x60] sm:$0xff]   ;;  %v5392_v25 = vld [vmem:[%s6820_s4 + $0x68] sm:$0xff]  }
 0x1f7   :  { %v1400_v0 = vmax.f32 %v6874_v7, %v1368_v41  ;;  %1734 = vmatpush1.bf16.msra.mxu1 %v1464_v44  ;;  %v5365_v8 = vld [vmem:[%s6819_s3 + $0xf0] ss:$8 sps:$4 sm:$0xff]   ;;  %v5366_v34 = vld [vmem:[%s6819_s3 + $0x104] ss:$8 sps:$4 sm:$0xff]   ;;  %v5368_v47 = vld [vmem:[%s6819_s3 + $0x100] ss:$8 sps:$4 sm:$0xff]  }
 0x1f8   :  { %1735 = vmatprep.subr.bf16.mxu1 %v6854_v32  ;;  %v1466_v61 = vpack.c.bf16 %v1402_v60, %v1401_v6  ;;  %v5396_v13 = vld [vmem:[%s6820_s4 + $0x70] sm:$0xff]   ;;  %v5372_v18 = vld [vmem:[%s6819_s3 + $0x124] ss:$8 sps:$4 sm:$0xff]   ;;  %v5374_v58 = vld [vmem:[%s6819_s3 + $0x120] ss:$8 sps:$4 sm:$0xff]  }
 0x1f9   :  { %v1465_v21 = vpack.c.bf16 %v1400_v0, %v1399_v52  ;;  %v5369_v44 = vld [vmem:[%s6819_s3 + $0x114] ss:$8 sps:$4 sm:$0xff]   ;;  %v5371_v40 = vld [vmem:[%s6819_s3 + $0x110] ss:$8 sps:$4 sm:$0xff]   ;;  %v5378_v9 = vld [vmem:[%s6819_s3 + $0x144] ss:$8 sps:$4 sm:$0xff]  }
 0x1fa   :  { %v5375_v50 = vld [vmem:[%s6819_s3 + $0x134] ss:$8 sps:$4 sm:$0xff]   ;;  %v5377_v22 = vld [vmem:[%s6819_s3 + $0x130] ss:$8 sps:$4 sm:$0xff]   ;;  %v5380_v51 = vld [vmem:[%s6819_s3 + $0x140] ss:$8 sps:$4 sm:$0xff]  }
 0x1fb   :  { %1736 = vmatpush1.bf16.msra.mxu1 %v1465_v21  ;;  %v5383_v30 = vld [vmem:[%s6819_s3 + $0x154] ss:$8 sps:$4 sm:$0xff]   ;;  %v5385_v4 = vld [vmem:[%s6819_s3 + $0x150] ss:$8 sps:$4 sm:$0xff]   ;;  %v5388_v20 = vld [vmem:[%s6819_s3 + $0x164] ss:$8 sps:$4 sm:$0xff]  }
 0x1fc   :  { %1737 = vmatprep.subr.bf16.mxu1 %v6854_v32  ;;  %v5326_v32 = vld [vmem:[%s6819_s3 + $0x20] ss:$8 sps:$4 sm:$0xff]   ;;  %v5393_v6 = vld [vmem:[%s6819_s3 + $0x174] ss:$8 sps:$4 sm:$0xff]   ;;  %v5395_v36 = vld [vmem:[%s6819_s3 + $0x170] ss:$8 sps:$4 sm:$0xff]  }
 0x1fd   :  { %v5390_v29 = vld [vmem:[%s6819_s3 + $0x160] ss:$8 sps:$4 sm:$0xff]  }
 0x1fe   :  { %v5398_v7 = vld [vmem:[%s6820_s4] sm:$0xff]  }
 0x1ff   :  { %1738 = vmatpush1.bf16.msra.mxu1 %v1466_v61 }
 0x200   :  { %4799 = vmatprep.subr.bf16.mxu1 %v5381_v10 }
 0x202   :  { %1740 = vmatmul.mubr.bf16.vlgmr.msra.gmra.mrb[0].mxu1 %v5318_v31 }
 0x203   :  { %1747 = vmatprep.mubr.bf16.mxu1 %v5321_v42  ;;  %4800 = vmatpush3.bf16.msra.mxu1 %v5381_v10 }
 0x204   :  { %4801 = vmatprep.subr.bf16.mxu1 %v5382_v16 }
 0x207   :  { %4802 = vmatpush3.bf16.msra.mxu1 %v5382_v16 }
 0x208   :  { %4803 = vmatprep.subr.bf16.mxu1 %v5386_v46 }
 0x20a   :  { %1748 = vmatmul.mubr.bf16.gmra.mrb[4].mxu1 %v5323_v63 }
 0x20b   :  { %1755 = vmatprep.mubr.bf16.mxu1 %v5324_v55  ;;  %4804 = vmatpush3.bf16.msra.mxu1 %v5386_v46  ;;  %v5402_v46 = vld [vmem:[%s6820_s4 + $0x20] sm:$0xff]  }
 0x20c   :  { %4805 = vmatprep.subr.bf16.mxu1 %v5387_v24 }
 0x20f   :  { %4806 = vmatpush3.bf16.msra.mxu1 %v5387_v24 }
 0x210   :  { %4807 = vmatprep.subr.bf16.mxu1 %v5391_v35 }
 0x212   :  { %1756 = vmatmul.mubr.bf16.gmra.mrb[8].mxu1 %v5326_v32 }
 0x213   :  { %1763 = vmatprep.mubr.bf16.mxu1 %v5327_v27  ;;  %4808 = vmatpush3.bf16.msra.mxu1 %v5391_v35 }
 0x214   :  { %4809 = vmatprep.subr.bf16.mxu1 %v5392_v25 }
 0x217   :  { %4810 = vmatpush3.bf16.msra.mxu1 %v5392_v25 }
 0x218   :  { %4811 = vmatprep.subr.bf16.mxu1 %v5396_v13 }
 0x21a   :  { %1764 = vmatmul.mubr.bf16.gmra.mrb[12].mxu1 %v5329_v54 }
 0x21b   :  { %1771 = vmatprep.mubr.bf16.mxu1 %v5330_v17  ;;  %4812 = vmatpush3.bf16.msra.mxu1 %v5396_v13 }
 0x21c   :  { %4813 = vmatprep.subr.bf16.mxu1 %v5397_v28 }
 0x21f   :  { %4814 = vmatpush3.bf16.msra.mxu1 %v5397_v28 }
 0x220   :  { %4847 = vmatprep.subr.bf16.mxu1 %v5398_v7 }
 0x222   :  { %1772 = vmatmul.mubr.bf16.gmra.mrb[16].mxu1 %v5332_v33 }
 0x223   :  { %1779 = vmatprep.mubr.bf16.mxu1 %v5333_v2 }
 0x22a   :  { %1780 = vmatmul.mubr.bf16.gmra.mrb[20].mxu1 %v5335_v38 }
 0x22b   :  { %1787 = vmatprep.mubr.bf16.mxu1 %v5336_v62 }
 0x232   :  { %1788 = vmatmul.mubr.bf16.gmra.mrb[24].mxu1 %v5338_v14 }
 0x233   :  { %1795 = vmatprep.mubr.bf16.mxu1 %v5339_v48 }
 0x23a   :  { %1796 = vmatmul.mubr.bf16.gmra.mrb[28].mxu1 %v5341_v56 }
 0x23b   :  { %1803 = vmatprep.mubr.bf16.mxu1 %v5342_v12 }
 0x242   :  { %1804 = vmatmul.mubr.bf16.gmra.mrb[32].mxu1 %v5344_v15 }
 0x243   :  { %1811 = vmatprep.mubr.bf16.mxu1 %v5345_v23 }
 0x24a   :  { %1812 = vmatmul.mubr.bf16.gmra.mrb[36].mxu1 %v5347_v26 }
 0x24b   :  { %1819 = vmatprep.mubr.bf16.mxu1 %v5348_v57 }
 0x252   :  { %1820 = vmatmul.mubr.bf16.gmra.mrb[40].mxu1 %v5350_v5 }
 0x253   :  { %1827 = vmatprep.mubr.bf16.mxu1 %v5351_v37 }
 0x25a   :  { %1828 = vmatmul.mubr.bf16.gmra.mrb[44].mxu1 %v5353_v45  ;;  %v5399_v45 = vld [vmem:[%s6820_s4 + $0x8] sm:$0xff]  }
 0x25b   :  { %1835 = vmatprep.mubr.bf16.mxu1 %v5354_v43  ;;  %v5400_v43 = vld [vmem:[%s6820_s4 + $0x10] sm:$0xff]  }
 0x262   :  { %1836 = vmatmul.mubr.bf16.gmra.mrb[48].mxu1 %v5356_v19 }
 0x263   :  { %1843 = vmatprep.mubr.bf16.mxu1 %v5357_v1 }
 0x26a   :  { %1844 = vmatmul.mubr.bf16.gmra.mrb[52].mxu1 %v5359_v39 }
 0x26b   :  { %1851 = vmatprep.mubr.bf16.mxu1 %v5360_v11  ;;  %v5401_v11 = vld [vmem:[%s6820_s4 + $0x18] sm:$0xff]  }
 0x272   :  { %1852 = vmatmul.mubr.bf16.gmra.mrb[56].mxu1 %v5362_v3 }
 0x273   :  { %1859 = vmatprep.mubr.bf16.mxu1 %v5363_v49 }
 0x27a   :  { %1860 = vmatmul.mubr.bf16.gmra.mrb[60].mxu1 %v5365_v8  ;;  %v5403_v8 = vld [vmem:[%s6820_s4 + $0x28] sm:$0xff]  }
 0x27b   :  { %1867 = vmatprep.mubr.bf16.mxu1 %v5366_v34  ;;  %v5404_v34 = vld [vmem:[%s6820_s4 + $0x30] sm:$0xff]  }
 0x282   :  { %1868 = vmatmul.mubr.bf16.gmra.mrb[64].mxu1 %v5368_v47 }
 0x283   :  { %1875 = vmatprep.mubr.bf16.mxu1 %v5369_v44 }
 0x28a   :  { %1876 = vmatmul.mubr.bf16.gmra.mrb[68].mxu1 %v5371_v40 }
 0x28b   :  { %1883 = vmatprep.mubr.bf16.mxu1 %v5372_v18  ;;  %v5405_v18 = vld [vmem:[%s6820_s4 + $0x38] sm:$0xff]  }
 0x292   :  { %1884 = vmatmul.mubr.bf16.gmra.mrb[72].mxu1 %v5374_v58  ;;  %v6420_v58 = vld [vmem:[%s6820_s4 + $0x80] sm:$0xff]  }
 0x293   :  { %1891 = vmatprep.mubr.bf16.mxu1 %v5375_v50 }
 0x29a   :  { %1892 = vmatmul.mubr.bf16.gmra.mrb[76].mxu1 %v5377_v22 }
 0x29b   :  { %1899 = vmatprep.mubr.bf16.mxu1 %v5378_v9 }
 0x2a2   :  { %1900 = vmatmul.mubr.bf16.gmra.mrb[80].mxu1 %v5380_v51 }
 0x2a3   :  { %1907 = vmatprep.mubr.bf16.mxu1 %v5383_v30 }
 0x2aa   :  { %1908 = vmatmul.mubr.bf16.gmra.mrb[84].mxu1 %v5385_v4 }
 0x2ab   :  { %1915 = vmatprep.mubr.bf16.mxu1 %v5388_v20 }
 0x2b2   :  { %1916 = vmatmul.mubr.bf16.gmra.mrb[88].mxu1 %v5390_v29 }
 0x2b3   :  { %1923 = vmatprep.mubr.bf16.mxu1 %v5393_v6 }
 0x2ba   :  { %1924 = vmatmul.mubr.bf16.gmra.mrb[92].mxu1 %v5395_v36 }
 0x2d5   :  { %v6354_v59 = vpop.f32.mrb[0].mxu1 }
 0x2d6   :  { %v1743_v52 = vpop.f32.mrb[1].mxu1 }
 0x2d7   :  { %v6356_v41 = vpop.f32.mrb[2].mxu1 }
 0x2d8   :  { %v1932_v53 = vpack.c.bf16 %v6356_v41, %v6354_v59  ;;  %v1746_v60 = vpop.f32.mrb[3].mxu1  ;;  %v5408_v59 = vld [vmem:[%s6820_s4 + $0x90] sm:$0xff]  }
 0x2dd   :  { %v6363_v0 = vpop.f32.mrb[4].mxu1 }
 0x2de   :  { %v1751_v61 = vpop.f32.mrb[5].mxu1 }
 0x2df   :  { %v6365_v21 = vpop.f32.mrb[6].mxu1 }
 0x2e0   :  { %v1933_v31 = vpack.c.bf16 %v6365_v21, %v6363_v0  ;;  %v1754_v42 = vpop.f32.mrb[7].mxu1  ;;  %v5409_v0 = vld [vmem:[%s6820_s4 + $0x98] sm:$0xff]  }
 0x2e5   :  { %v6369_v63 = vpop.f32.mrb[8].mxu1 }
 0x2e6   :  { %v1759_v55 = vpop.f32.mrb[9].mxu1 }
 0x2e7   :  { %v6371_v32 = vpop.f32.mrb[10].mxu1 }
 0x2e8   :  { %v1934_v27 = vpack.c.bf16 %v6371_v32, %v6369_v63  ;;  %v1762_v54 = vpop.f32.mrb[11].mxu1  ;;  %v5410_v63 = vld [vmem:[%s6820_s4 + $0xa0] sm:$0xff]  }
 0x2ed   :  { %v6375_v17 = vpop.f32.mrb[12].mxu1 }
 0x2ee   :  { %v1767_v33 = vpop.f32.mrb[13].mxu1 }
 0x2ef   :  { %v6377_v2 = vpop.f32.mrb[14].mxu1 }
 0x2f0   :  { %v1935_v38 = vpack.c.bf16 %v6377_v2, %v6375_v17  ;;  %v1770_v62 = vpop.f32.mrb[15].mxu1  ;;  %v5412_v2 = vld [vmem:[%s6820_s4 + $0xb0] sm:$0xff]  }
 0x2f5   :  { %v1773_v14 = vpop.f32.mrb[16].mxu1 }
 0x2f6   :  { %v1775_v48 = vpop.f32.mrb[17].mxu1 }
 0x2f7   :  { %v1776_v56 = vpop.f32.mrb[18].mxu1 }
 0x2f8   :  { %v6381_v12 = vpack.c.bf16 %v1776_v56, %v1773_v14  ;;  %v1778_v15 = vpop.f32.mrb[19].mxu1 }
 0x2fa   :  { %4815 = vmatprep.mubr.bf16.mxu1 %v6381_v12 }
 0x2fd   :  { %v1781_v23 = vpop.f32.mrb[20].mxu1 }
 0x2fe   :  { %v1783_v26 = vpop.f32.mrb[21].mxu1 }
 0x2ff   :  { %v1784_v57 = vpop.f32.mrb[22].mxu1 }
 0x300   :  { %v6384_v5 = vpack.c.bf16 %v1784_v57, %v1781_v23  ;;  %v1786_v37 = vpop.f32.mrb[23].mxu1 }
 0x302   :  { %4816 = vmatmul.mubr.bf16.vlgmr.msra.gmra.mrb[96].mxu1 %v6384_v5 }
 0x303   :  { %4848 = vmatpush3.bf16.msra.mxu1 %v5398_v7 }
 0x304   :  { %4849 = vmatprep.subr.bf16.mxu1 %v5399_v45 }
 0x305   :  { %v1789_v19 = vpop.f32.mrb[24].mxu1 }
 0x306   :  { %v1791_v1 = vpop.f32.mrb[25].mxu1 }
 0x307   :  { %v1792_v10 = vpop.f32.mrb[26].mxu1  ;;  %4850 = vmatpush3.bf16.msra.mxu1 %v5399_v45 }
 0x308   :  { %v6393_v16 = vpack.c.bf16 %v1792_v10, %v1789_v19  ;;  %v1794_v39 = vpop.f32.mrb[27].mxu1  ;;  %4851 = vmatprep.subr.bf16.mxu1 %v5400_v43 }
 0x30a   :  { %4819 = vmatprep.mubr.bf16.mxu1 %v6393_v16 }
 0x30b   :  { %4852 = vmatpush3.bf16.msra.mxu1 %v5400_v43 }
 0x30c   :  { %4853 = vmatprep.subr.bf16.mxu1 %v5401_v11 }
 0x30d   :  { %v1797_v24 = vpop.f32.mrb[28].mxu1 }
 0x30e   :  { %v1799_v3 = vpop.f32.mrb[29].mxu1 }
 0x30f   :  { %v1800_v49 = vpop.f32.mrb[30].mxu1  ;;  %4854 = vmatpush3.bf16.msra.mxu1 %v5401_v11 }
 0x310   :  { %v6402_v35 = vpack.c.bf16 %v1800_v49, %v1797_v24  ;;  %v1802_v25 = vpop.f32.mrb[31].mxu1  ;;  %4855 = vmatprep.subr.bf16.mxu1 %v5402_v46 }
 0x312   :  { %4820 = vmatmul.mubr.bf16.gmra.mrb[100].mxu1 %v6402_v35 }
 0x313   :  { %4856 = vmatpush3.bf16.msra.mxu1 %v5402_v46 }
 0x314   :  { %4857 = vmatprep.subr.bf16.mxu1 %v5403_v8 }
 0x315   :  { %v1805_v13 = vpop.f32.mrb[32].mxu1 }
 0x316   :  { %v1807_v28 = vpop.f32.mrb[33].mxu1 }
 0x317   :  { %v1808_v47 = vpop.f32.mrb[34].mxu1  ;;  %4858 = vmatpush3.bf16.msra.mxu1 %v5403_v8 }
 0x318   :  { %v6411_v44 = vpack.c.bf16 %v1808_v47, %v1805_v13  ;;  %v1810_v40 = vpop.f32.mrb[35].mxu1  ;;  %4859 = vmatprep.subr.bf16.mxu1 %v5404_v34 }
 0x31a   :  { %4823 = vmatprep.mubr.bf16.mxu1 %v6411_v44 }
 0x31b   :  { %4860 = vmatpush3.bf16.msra.mxu1 %v5404_v34 }
 0x31c   :  { %4861 = vmatprep.subr.bf16.mxu1 %v5405_v18 }
 0x31d   :  { %v1813_v50 = vpop.f32.mrb[36].mxu1 }
 0x31e   :  { %v1815_v22 = vpop.f32.mrb[37].mxu1 }
 0x31f   :  { %v1816_v9 = vpop.f32.mrb[38].mxu1  ;;  %4862 = vmatpush3.bf16.msra.mxu1 %v5405_v18 }
 0x320   :  { %v6422_v51 = vpack.c.bf16 %v1816_v9, %v1813_v50  ;;  %v1818_v30 = vpop.f32.mrb[39].mxu1  ;;  %4895 = vmatprep.subr.bf16.mxu1 %v6420_v58 }
 0x322   :  { %4824 = vmatmul.mubr.bf16.gmra.mrb[104].mxu1 %v6422_v51 }
 0x325   :  { %v1821_v4 = vpop.f32.mrb[40].mxu1 }
 0x326   :  { %v1823_v20 = vpop.f32.mrb[41].mxu1 }
 0x327   :  { %v1824_v29 = vpop.f32.mrb[42].mxu1 }
 0x328   :  { %v6426_v6 = vpack.c.bf16 %v1824_v29, %v1821_v4  ;;  %v1826_v36 = vpop.f32.mrb[43].mxu1 }
 0x32a   :  { %4827 = vmatprep.mubr.bf16.mxu1 %v6426_v6 }
 0x32d   :  { %v1829_v52 = vpop.f32.mrb[44].mxu1 }
 0x32e   :  { %v1831_v60 = vpop.f32.mrb[45].mxu1 }
 0x32f   :  { %v1832_v7 = vpop.f32.mrb[46].mxu1 }
 0x330   :  { %v6429_v61 = vpack.c.bf16 %v1832_v7, %v1829_v52  ;;  %v1834_v42 = vpop.f32.mrb[47].mxu1 }
 0x332   :  { %4828 = vmatmul.mubr.bf16.gmra.mrb[108].mxu1 %v6429_v61 }
 0x335   :  { %v1837_v55 = vpop.f32.mrb[48].mxu1 }
 0x336   :  { %v1839_v54 = vpop.f32.mrb[49].mxu1 }
 0x337   :  { %v1840_v33 = vpop.f32.mrb[50].mxu1 }
 0x338   :  { %v6432_v62 = vpack.c.bf16 %v1840_v33, %v1837_v55  ;;  %v1842_v14 = vpop.f32.mrb[51].mxu1  ;;  %v5407_v55 = vld [vmem:[%s6820_s4 + $0x88] sm:$0xff]  }
 0x33a   :  { %4831 = vmatprep.mubr.bf16.mxu1 %v6432_v62 }
 0x33d   :  { %v1845_v48 = vpop.f32.mrb[52].mxu1 }
 0x33e   :  { %v1847_v56 = vpop.f32.mrb[53].mxu1 }
 0x33f   :  { %v1848_v15 = vpop.f32.mrb[54].mxu1 }
 0x340   :  { %v6435_v23 = vpack.c.bf16 %v1848_v15, %v1845_v48  ;;  %v1850_v26 = vpop.f32.mrb[55].mxu1  ;;  %v5411_v48 = vld [vmem:[%s6820_s4 + $0xa8] sm:$0xff]  }
 0x341   :  { %v5413_v26 = vld [vmem:[%s6820_s4 + $0xb8] sm:$0xff]  }
 0x342   :  { %4832 = vmatmul.mubr.bf16.gmra.mrb[112].mxu1 %v6435_v23 }
 0x345   :  { %v1853_v57 = vpop.f32.mrb[56].mxu1 }
 0x346   :  { %v1855_v37 = vpop.f32.mrb[57].mxu1 }
 0x347   :  { %v1856_v45 = vpop.f32.mrb[58].mxu1 }
 0x348   :  { %v6438_v43 = vpack.c.bf16 %v1856_v45, %v1853_v57  ;;  %v1858_v19 = vpop.f32.mrb[59].mxu1  ;;  %v6530_v45 = vld [vmem:[%s6823_s5] ss:$0 sm:$0xff] }
 0x34a   :  { %4835 = vmatprep.mubr.bf16.mxu1 %v6438_v43 }
 0x34d   :  { %v1861_v1 = vpop.f32.mrb[60].mxu1 }
 0x34e   :  { %v1863_v10 = vpop.f32.mrb[61].mxu1 }
 0x34f   :  { %v1864_v39 = vpop.f32.mrb[62].mxu1 }
 0x350   :  { %v6441_v11 = vpack.c.bf16 %v1864_v39, %v1861_v1  ;;  %v1866_v46 = vpop.f32.mrb[63].mxu1 }
 0x352   :  { %4836 = vmatmul.mubr.bf16.gmra.mrb[116].mxu1 %v6441_v11 }
 0x355   :  { %v1869_v24 = vpop.f32.mrb[64].mxu1 }
 0x356   :  { %v1871_v3 = vpop.f32.mrb[65].mxu1 }
 0x357   :  { %v1872_v49 = vpop.f32.mrb[66].mxu1 }
 0x358   :  { %v6444_v25 = vpack.c.bf16 %v1872_v49, %v1869_v24  ;;  %v1874_v8 = vpop.f32.mrb[67].mxu1 }
 0x35a   :  { %4839 = vmatprep.mubr.bf16.mxu1 %v6444_v25 }
 0x35d   :  { %v1877_v34 = vpop.f32.mrb[68].mxu1 }
 0x35e   :  { %v1879_v13 = vpop.f32.mrb[69].mxu1 }
 0x35f   :  { %v1880_v28 = vpop.f32.mrb[70].mxu1 }
 0x360   :  { %v6447_v47 = vpack.c.bf16 %v1880_v28, %v1877_v34  ;;  %v1882_v40 = vpop.f32.mrb[71].mxu1 }
 0x362   :  { %4840 = vmatmul.mubr.bf16.gmra.mrb[120].mxu1 %v6447_v47 }
 0x365   :  { %v1885_v18 = vpop.f32.mrb[72].mxu1 }
 0x366   :  { %v1887_v50 = vpop.f32.mrb[73].mxu1 }
 0x367   :  { %v1888_v22 = vpop.f32.mrb[74].mxu1 }
 0x368   :  { %v6450_v9 = vpack.c.bf16 %v1888_v22, %v1885_v18  ;;  %v1890_v30 = vpop.f32.mrb[75].mxu1 }
 0x36a   :  { %4843 = vmatprep.mubr.bf16.mxu1 %v6450_v9 }
 0x36d   :  { %v1893_v4 = vpop.f32.mrb[76].mxu1 }
 0x36e   :  { %v1895_v20 = vpop.f32.mrb[77].mxu1 }
 0x36f   :  { %v1896_v29 = vpop.f32.mrb[78].mxu1 }
 0x370   :  { %v6453_v36 = vpack.c.bf16 %v1896_v29, %v1893_v4  ;;  %v1898_v52 = vpop.f32.mrb[79].mxu1 }
 0x372   :  { %4844 = vmatmul.mubr.bf16.gmra.mrb[124].mxu1 %v6453_v36 }
 0x373   :  { %4863 = vmatprep.mubr.bf16.mxu1 %v1932_v53 }
 0x375   :  { %v6459_v60 = vpop.f32.mrb[80].mxu1 }
 0x376   :  { %v1903_v7 = vpop.f32.mrb[81].mxu1 }
 0x377   :  { %v6461_v42 = vpop.f32.mrb[82].mxu1 }
 0x378   :  { %v1952_v54 = vpack.c.bf16 %v6461_v42, %v6459_v60  ;;  %v1906_v33 = vpop.f32.mrb[83].mxu1 }
 0x37a   :  { %4864 = vmatmul.mubr.bf16.vlgmr.msra.gmra.mrb[96].mxu1 %v1933_v31 }
 0x37b   :  { %4867 = vmatprep.mubr.bf16.mxu1 %v1934_v27  ;;  %4896 = vmatpush3.bf16.msra.mxu1 %v6420_v58 }
 0x37c   :  { %4897 = vmatprep.subr.bf16.mxu1 %v5407_v55 }
 0x37d   :  { %v1909_v41 = vpop.f32.mrb[84].mxu1 }
 0x37e   :  { %v1911_v53 = vpop.f32.mrb[85].mxu1 }
 0x37f   :  { %4898 = vmatpush3.bf16.msra.mxu1 %v5407_v55  ;;  %v1912_v14 = vpop.f32.mrb[86].mxu1 }
 0x380   :  { %4899 = vmatprep.subr.bf16.mxu1 %v5408_v59  ;;  %v1953_v21 = vpack.c.bf16 %v1912_v14, %v1909_v41  ;;  %v1914_v31 = vpop.f32.mrb[87].mxu1 }
 0x382   :  { %4868 = vmatmul.mubr.bf16.gmra.mrb[100].mxu1 %v1935_v38 }
 0x383   :  { %4871 = vmatprep.mubr.bf16.mxu1 %v6381_v12  ;;  %4900 = vmatpush3.bf16.msra.mxu1 %v5408_v59 }
 0x384   :  { %4901 = vmatprep.subr.bf16.mxu1 %v5409_v0 }
 0x385   :  { %v1917_v32 = vpop.f32.mrb[88].mxu1 }
 0x386   :  { %v1919_v27 = vpop.f32.mrb[89].mxu1 }
 0x387   :  { %4902 = vmatpush3.bf16.msra.mxu1 %v5409_v0  ;;  %v1920_v58 = vpop.f32.mrb[90].mxu1 }
 0x388   :  { %4903 = vmatprep.subr.bf16.mxu1 %v5410_v63  ;;  %v1954_v56 = vpack.c.bf16 %v1920_v58, %v1917_v32  ;;  %v1922_v17 = vpop.f32.mrb[91].mxu1 }
 0x38a   :  { %4872 = vmatmul.mubr.bf16.gmra.mrb[104].mxu1 %v6384_v5  ;;  %v5414_v5 = vld [vmem:[%s6821_s6] sm:$0xff]  }
 0x38b   :  { %4875 = vmatprep.mubr.bf16.mxu1 %v6393_v16  ;;  %4904 = vmatpush3.bf16.msra.mxu1 %v5410_v63 }
 0x38c   :  { %4905 = vmatprep.subr.bf16.mxu1 %v5411_v48  ;;  %4951 = vmatprep.mubr.msk.bf16.mxu0 %vm2806_vm0, %v5414_v5 }
 0x38d   :  { %v1925_v38 = vpop.f32.mrb[92].mxu1 }
 0x38e   :  { %v1927_v12 = vpop.f32.mrb[93].mxu1 }
 0x38f   :  { %4906 = vmatpush3.bf16.msra.mxu1 %v5411_v48  ;;  %v1928_v15 = vpop.f32.mrb[94].mxu1 }
 0x390   :  { %4907 = vmatprep.subr.bf16.mxu1 %v5412_v2  ;;  %v1955_v57 = vpack.c.bf16 %v1928_v15, %v1925_v38  ;;  %v1930_v37 = vpop.f32.mrb[95].mxu1 }
 0x392   :  { %4876 = vmatmul.mubr.bf16.gmra.mrb[108].mxu1 %v6402_v35 }
 0x393   :  { %4879 = vmatprep.mubr.bf16.mxu1 %v6411_v44  ;;  %4908 = vmatpush3.bf16.msra.mxu1 %v5412_v2 }
 0x394   :  { %4909 = vmatprep.subr.bf16.mxu1 %v5413_v26 }
 0x397   :  { %4910 = vmatpush3.bf16.msra.mxu1 %v5413_v26 }
 0x39a   :  { %4880 = vmatmul.mubr.bf16.gmra.mrb[112].mxu1 %v6422_v51 }
 0x39b   :  { %4883 = vmatprep.mubr.bf16.mxu1 %v6426_v6 }
 0x3a2   :  { %4884 = vmatmul.mubr.bf16.gmra.mrb[116].mxu1 %v6429_v61 }
 0x3a3   :  { %4887 = vmatprep.mubr.bf16.mxu1 %v6432_v62 }
 0x3aa   :  { %4888 = vmatmul.mubr.bf16.gmra.mrb[120].mxu1 %v6435_v23 }
 0x3ab   :  { %4891 = vmatprep.mubr.bf16.mxu1 %v6438_v43 }
 0x3b2   :  { %4892 = vmatmul.mubr.bf16.gmra.mrb[124].mxu1 %v6441_v11 }
 0x3b3   :  { %4911 = vmatprep.mubr.bf16.mxu1 %v6411_v44 }
 0x3ba   :  { %4912 = vmatmul.mubr.bf16.vlgmr.msra.gmra.mrb[96].mxu1 %v6422_v51 }
 0x3bb   :  { %4915 = vmatprep.mubr.bf16.mxu1 %v6426_v6 }
 0x3c2   :  { %4916 = vmatmul.mubr.bf16.gmra.mrb[100].mxu1 %v6429_v61 }
 0x3c3   :  { %4919 = vmatprep.mubr.bf16.mxu1 %v6432_v62 }
 0x3ca   :  { %4920 = vmatmul.mubr.bf16.gmra.mrb[104].mxu1 %v6435_v23 }
 0x3cb   :  { %4923 = vmatprep.mubr.bf16.mxu1 %v6438_v43 }
 0x3d2   :  { %4924 = vmatmul.mubr.bf16.gmra.mrb[108].mxu1 %v6441_v11 }
 0x3d3   :  { %4927 = vmatprep.mubr.bf16.mxu1 %v6444_v25 }
 0x3da   :  { %4928 = vmatmul.mubr.bf16.gmra.mrb[112].mxu1 %v6447_v47 }
 0x3db   :  { %4931 = vmatprep.mubr.bf16.mxu1 %v6450_v9 }
 0x3e2   :  { %4932 = vmatmul.mubr.bf16.gmra.mrb[116].mxu1 %v6453_v36 }
 0x3e3   :  { %4935 = vmatprep.mubr.bf16.mxu1 %v1952_v54 }
 0x3ea   :  { %4936 = vmatmul.mubr.bf16.gmra.mrb[120].mxu1 %v1953_v21 }
 0x3eb   :  { %4939 = vmatprep.mubr.bf16.mxu1 %v1954_v56 }
 0x3f2   :  { %4940 = vmatmul.mubr.bf16.gmra.mrb[124].mxu1 %v1955_v57 }
 0x48d   :  { %v4913_v16 = vpop.f32.mrb[96].mxu1 }
 0x48e   :  { %v2506_v35 = vpop.f32.mrb[97].mxu1  ;;  %v2674_v43 = vadd.f32 %v4913_v16, %v6530_v45 }
 0x48f   :  { %v4914_v44 = vpop.f32.mrb[98].mxu1  ;;  %v2672_v19 = vadd.f32 %v6530_v45, %v2506_v35 }
 0x490   :  { %v2509_v51 = vpop.f32.mrb[99].mxu1  ;;  %v2675_v10 = vadd.f32 %v4914_v44, %v6530_v45  ;;  %v2706_v49 = vmax.f32 %v2674_v43, 0.0 }
 0x491   :  { %v2673_v46 = vadd.f32 %v6530_v45, %v2509_v51  ;;  %v2704_v13 = vmax.f32 %v2672_v19, 0.0 }
 0x492   :  { %v2707_v40 = vmax.f32 %v2675_v10, 0.0 }
 0x493   :  { %v2705_v22 = vmax.f32 %v2673_v46, 0.0 }
 0x495   :  { %v4917_v6 = vpop.f32.mrb[100].mxu1 }
 0x496   :  { %v2522_v61 = vpop.f32.mrb[101].mxu1  ;;  %v2678_v4 = vadd.f32 %v4917_v6, %v6530_v45 }
 0x497   :  { %v4918_v62 = vpop.f32.mrb[102].mxu1  ;;  %v2676_v29 = vadd.f32 %v6530_v45, %v2522_v61 }
 0x498   :  { %v2525_v23 = vpop.f32.mrb[103].mxu1  ;;  %v2679_v60 = vadd.f32 %v4918_v62, %v6530_v45  ;;  %v2710_v59 = vmax.f32 %v2678_v4, 0.0 }
 0x499   :  { %v2677_v55 = vadd.f32 %v6530_v45, %v2525_v23  ;;  %v2708_v0 = vmax.f32 %v2676_v29, 0.0 }
 0x49a   :  { %v2711_v63 = vmax.f32 %v2679_v60, 0.0 }
 0x49b   :  { %v2709_v58 = vmax.f32 %v2677_v55, 0.0 }
 0x49d   :  { %v4921_v1 = vpop.f32.mrb[104].mxu1 }
 0x49e   :  { %v2682_v39 = vadd.f32 %v4921_v1, %v6530_v45  ;;  %v2538_v11 = vpop.f32.mrb[105].mxu1 }
 0x49f   :  { %v2680_v24 = vadd.f32 %v6530_v45, %v2538_v11  ;;  %v4922_v3 = vpop.f32.mrb[106].mxu1 }
 0x4a0   :  { %v2714_v25 = vmax.f32 %v2682_v39, 0.0  ;;  %v2683_v8 = vadd.f32 %v4922_v3, %v6530_v45  ;;  %v2541_v34 = vpop.f32.mrb[107].mxu1 }
 0x4a1   :  { %v2712_v28 = vmax.f32 %v2680_v24, 0.0  ;;  %v2681_v47 = vadd.f32 %v6530_v45, %v2541_v34 }
 0x4a2   :  { %v6540_v18 = vmax.f32 %v2706_v49, %v2714_v25  ;;  %v2715_v50 = vmax.f32 %v2683_v8, 0.0 }
 0x4a3   :  { %v6542_v9 = vmax.f32 %v2704_v13, %v2712_v28  ;;  %v2713_v30 = vmax.f32 %v2681_v47, 0.0 }
 0x4a4   :  { %v6545_v20 = vmax.f32 %v2707_v40, %v2715_v50 }
 0x4a5   :  { %v6548_v36 = vmax.f32 %v2705_v22, %v2713_v30  ;;  %v4925_v52 = vpop.f32.mrb[108].mxu1 }
 0x4a6   :  { %v2686_v7 = vadd.f32 %v4925_v52, %v6530_v45  ;;  %v2554_v42 = vpop.f32.mrb[109].mxu1 }
 0x4a7   :  { %v2684_v54 = vadd.f32 %v6530_v45, %v2554_v42  ;;  %v4926_v33 = vpop.f32.mrb[110].mxu1 }
 0x4a8   :  { %v2718_v41 = vmax.f32 %v2686_v7, 0.0  ;;  %v2687_v53 = vadd.f32 %v4926_v33, %v6530_v45  ;;  %v2557_v14 = vpop.f32.mrb[111].mxu1 }
 0x4a9   :  { %v2716_v21 = vmax.f32 %v2684_v54, 0.0  ;;  %v2685_v31 = vadd.f32 %v6530_v45, %v2557_v14 }
 0x4aa   :  { %v6556_v32 = vmax.f32 %v2710_v59, %v2718_v41  ;;  %v2719_v27 = vmax.f32 %v2687_v53, 0.0 }
 0x4ab   :  { %v6558_v48 = vmax.f32 %v2708_v0, %v2716_v21  ;;  %v2717_v56 = vmax.f32 %v2685_v31, 0.0 }
 0x4ac   :  { %v6560_v17 = vmax.f32 %v2711_v63, %v2719_v27 }
 0x4ad   :  { %v6562_v2 = vmax.f32 %v2709_v58, %v2717_v56  ;;  %v4929_v38 = vpop.f32.mrb[112].mxu1 }
 0x4ae   :  { %v2570_v12 = vpop.f32.mrb[113].mxu1  ;;  %v2690_v35 = vadd.f32 %v4929_v38, %v6530_v45 }
 0x4af   :  { %v4930_v15 = vpop.f32.mrb[114].mxu1  ;;  %v2688_v44 = vadd.f32 %v6530_v45, %v2570_v12 }
 0x4b0   :  { %v2573_v26 = vpop.f32.mrb[115].mxu1  ;;  %v2691_v6 = vadd.f32 %v4930_v15, %v6530_v45  ;;  %v2722_v1 = vmax.f32 %v2690_v35, 0.0  ;;  %v5422_v35 = vld [vmem:[%s6822_s7 + $0x10] sm:$0xff]  }
 0x4b1   :  { %v2689_v23 = vadd.f32 %v6530_v45, %v2573_v26  ;;  %v2720_v46 = vmax.f32 %v2688_v44, 0.0  ;;  %v5417_v44 = vld [vmem:[%s6821_s6 + $0x18] sm:$0xff]  }
 0x4b2   :  { %v2723_v49 = vmax.f32 %v2691_v6, 0.0  ;;  %v5423_v6 = vld [vmem:[%s6822_s7 + $0x18] sm:$0xff]  }
 0x4b3   :  { %v2721_v34 = vmax.f32 %v2689_v23, 0.0  ;;  %v5425_v23 = vld [vmem:[%s6822_s7 + $0x28] sm:$0xff]  }
 0x4b5   :  { %v4933_v57 = vpop.f32.mrb[116].mxu1 }
 0x4b6   :  { %v2586_v37 = vpop.f32.mrb[117].mxu1  ;;  %v2694_v47 = vadd.f32 %v4933_v57, %v6530_v45 }
 0x4b7   :  { %v4934_v5 = vpop.f32.mrb[118].mxu1  ;;  %v2692_v22 = vadd.f32 %v6530_v45, %v2586_v37 }
 0x4b8   :  { %v2589_v16 = vpop.f32.mrb[119].mxu1  ;;  %v2695_v52 = vadd.f32 %v4934_v5, %v6530_v45  ;;  %v2726_v59 = vmax.f32 %v2694_v47, 0.0 }
 0x4b9   :  { %v2693_v55 = vadd.f32 %v6530_v45, %v2589_v16  ;;  %v2724_v0 = vmax.f32 %v2692_v22, 0.0 }
 0x4ba   :  { %v2727_v63 = vmax.f32 %v2695_v52, 0.0 }
 0x4bb   :  { %v2725_v56 = vmax.f32 %v2693_v55, 0.0 }
 0x4bd   :  { %v4937_v51 = vpop.f32.mrb[120].mxu1 }
 0x4be   :  { %v2698_v61 = vadd.f32 %v4937_v51, %v6530_v45  ;;  %v2602_v62 = vpop.f32.mrb[121].mxu1  ;;  %v5418_v51 = vld [vmem:[%s6821_s6 + $0x20] sm:$0xff]  }
 0x4bf   :  { %v2696_v43 = vadd.f32 %v6530_v45, %v2602_v62  ;;  %v4938_v19 = vpop.f32.mrb[122].mxu1  ;;  %v5419_v62 = vld [vmem:[%s6821_s6 + $0x28] sm:$0xff]  }
 0x4c0   :  { %v2730_v10 = vmax.f32 %v2698_v61, 0.0  ;;  %v2699_v39 = vadd.f32 %v4938_v19, %v6530_v45  ;;  %v2605_v11 = vpop.f32.mrb[123].mxu1  ;;  %v5424_v61 = vld [vmem:[%s6822_s7 + $0x20] sm:$0xff]  }
 0x4c1   :  { %v2728_v24 = vmax.f32 %v2696_v43, 0.0  ;;  %v2697_v3 = vadd.f32 %v6530_v45, %v2605_v11  ;;  %v5426_v43 = vld [vmem:[%s6822_s7 + $0x30] sm:$0xff]   ;;  %v5428_v19 = vld [vmem:[%s6822_s7 + $0x40] sm:$0xff]   ;;  %v5434_v11 = vld [vmem:[%s6822_s7 + $0x58] sm:$0xff]  }
 0x4c2   :  { %v2746_v25 = vmax.f32 %v2722_v1, %v2730_v10  ;;  %v2731_v8 = vmax.f32 %v2699_v39, 0.0  ;;  %4963 = vmatprep.subr.bf16.mxu1 %v5428_v19  ;;  %v5430_v1 = vld [vmem:[%s6822_s7 + $0x48] sm:$0xff]   ;;  %v5432_v10 = vld [vmem:[%s6822_s7 + $0x50] sm:$0xff]   ;;  %v5427_v39 = vld [vmem:[%s6822_s7 + $0x38] sm:$0xff]  }
 0x4c3   :  { %v2744_v13 = vmax.f32 %v2720_v46, %v2728_v24  ;;  %v2729_v28 = vmax.f32 %v2697_v3, 0.0  ;;  %4964 = vmatpush3.bf16.msra.mxu1 %v5428_v19  ;;  %v5429_v46 = vld [vmem:[%s6822_s7 + $0x80] sm:$0xff]   ;;  %v5438_v3 = vld [vmem:[%s6822_s7 + $0x68] sm:$0xff]  }
 0x4c4   :  { %v2754_v40 = vmax.f32 %v6540_v18, %v2746_v25  ;;  %v2747_v50 = vmax.f32 %v2723_v49, %v2731_v8  ;;  %4965 = vmatprep.subr.bf16.mxu1 %v5430_v1  ;;  %v5436_v24 = vld [vmem:[%s6822_s7 + $0x60] sm:$0xff]   ;;  %v5440_v49 = vld [vmem:[%s6822_s7 + $0x70] sm:$0xff]   ;;  %v5442_v25 = vld [vmem:[%s6822_s7 + $0x78] sm:$0xff]  }
 0x4c5   :  { %v2752_v30 = vmax.f32 %v6542_v9, %v2744_v13  ;;  %v2745_v4 = vmax.f32 %v2721_v34, %v2729_v28  ;;  %v4941_v29 = vpop.f32.mrb[124].mxu1 }
 0x4c6   :  { %v2755_v60 = vmax.f32 %v6545_v20, %v2747_v50  ;;  %v2702_v7 = vadd.f32 %v4941_v29, %v6530_v45  ;;  %v2618_v42 = vpop.f32.mrb[125].mxu1  ;;  %v5431_v50 = vld [vmem:[%s6822_s7 + $0x88] sm:$0xff]  }
 0x4c7   :  { %v2753_v54 = vmax.f32 %v6548_v36, %v2745_v4  ;;  %v2700_v18 = vadd.f32 %v6530_v45, %v2618_v42  ;;  %v4942_v33 = vpop.f32.mrb[126].mxu1  ;;  %4966 = vmatpush3.bf16.msra.mxu1 %v5430_v1  ;;  %v5435_v42 = vld [vmem:[%s6822_s7 + $0x98] sm:$0xff]  }
 0x4c8   :  { %v2734_v41 = vmax.f32 %v2702_v7, 0.0  ;;  %v2703_v9 = vadd.f32 %v4942_v33, %v6530_v45  ;;  %v2621_v53 = vpop.f32.mrb[127].mxu1  ;;  %v2773_v14 = vpack.c.bf16 %v2755_v60, %v2754_v40  ;;  %4967 = vmatprep.subr.bf16.mxu1 %v5432_v10 }
 0x4c9   :  { %v2732_v21 = vmax.f32 %v2700_v18, 0.0  ;;  %v2701_v20 = vadd.f32 %v6530_v45, %v2621_v53  ;;  %v2772_v31 = vpack.c.bf16 %v2753_v54, %v2752_v30  ;;  %v5433_v30 = vld [vmem:[%s6822_s7 + $0x90] sm:$0xff]   ;;  %v5437_v54 = vld [vmem:[%s6822_s7 + $0xa0] sm:$0xff]   ;;  %v5439_v53 = vld [vmem:[%s6822_s7 + $0xa8] sm:$0xff]  }
 0x4ca   :  { %v2750_v27 = vmax.f32 %v2726_v59, %v2734_v41  ;;  %v2735_v58 = vmax.f32 %v2703_v9, 0.0 }
 0x4cb   :  { %v2748_v38 = vmax.f32 %v2724_v0, %v2732_v21  ;;  %v2733_v36 = vmax.f32 %v2701_v20, 0.0  ;;  %4943 = vmatprep.subr.bf16.mxu0 %v2772_v31  ;;  %4968 = vmatpush3.bf16.msra.mxu1 %v5432_v10  ;;  %v5443_v0 = vld [vmem:[%s6822_s7 + $0xb8] sm:$0xff]   ;;  %v5444_v21 = vld [vmem:[%s6824_s9] sm:$0xff]  }
 0x4cc   :  { %v2758_v12 = vmax.f32 %v6556_v32, %v2750_v27  ;;  %v2751_v15 = vmax.f32 %v2727_v63, %v2735_v58  ;;  %4944 = vmatpush3.bf16.msra.mxu0 %v2772_v31  ;;  %v5420_v32 = vld [vmem:[%s6822_s7] sm:$0xff]   ;;  %4969 = vmatprep.subr.bf16.mxu1 %v5434_v11 }
 0x4cd   :  { %v2756_v26 = vmax.f32 %v6558_v48, %v2748_v38  ;;  %v2749_v57 = vmax.f32 %v2725_v56, %v2733_v36  ;;  %4945 = vmatprep.subr.bf16.mxu0 %v2773_v14  ;;  %v5415_v48 = vld [vmem:[%s6821_s6 + $0x8] sm:$0xff]  }
 0x4ce   :  { %v2759_v37 = vmax.f32 %v6560_v17, %v2751_v15  ;;  %v5416_v17 = vld [vmem:[%s6821_s6 + $0x10] sm:$0xff]   ;;  %v4331_v15 = vld [vmem:[%s6826_s8] ss:$0 sm:$0xff] }
 0x4cf   :  { %v2757_v45 = vmax.f32 %v6562_v2, %v2749_v57  ;;  %v5421_v2 = vld [vmem:[%s6822_s7 + $0x8] sm:$0xff]   ;;  %4970 = vmatpush3.bf16.msra.mxu1 %v5434_v11 }
 0x4d0   :  { %4946 = vmatpush3.bf16.msra.mxu0 %v2773_v14  ;;  %v2775_v5 = vpack.c.bf16 %v2759_v37, %v2758_v12  ;;  %4971 = vmatprep.subr.bf16.mxu1 %v5436_v24  ;;  %v5441_v14 = vld [vmem:[%s6822_s7 + $0xb0] sm:$0xff]  }
 0x4d1   :  { %v2774_v16 = vpack.c.bf16 %v2757_v45, %v2756_v26 }
 0x4d3   :  { %4947 = vmatprep.subr.bf16.mxu0 %v2774_v16  ;;  %4972 = vmatpush3.bf16.msra.mxu1 %v5436_v24 }
 0x4d4   :  { %4948 = vmatpush3.bf16.msra.mxu0 %v2774_v16  ;;  %4973 = vmatprep.subr.bf16.mxu1 %v5438_v3 }
 0x4d5   :  { %4949 = vmatprep.subr.bf16.mxu0 %v2775_v5 }
 0x4d7   :  { %4974 = vmatpush3.bf16.msra.mxu1 %v5438_v3 }
 0x4d8   :  { %4950 = vmatpush3.bf16.msra.mxu0 %v2775_v5  ;;  %4975 = vmatprep.subr.bf16.mxu1 %v5440_v49 }
 0x4d9   :  { %4987 = vmatprep.subr.bf16.mxu0 %v5420_v32 }
 0x4db   :  { %4952 = vmatmul.mubr.msk.bf16.vlgmr.msra.gmra.mrb[128].mxu0 %vm2806_vm0, %v5415_v48  ;;  %4976 = vmatpush3.bf16.msra.mxu1 %v5440_v49 }
 0x4dc   :  { %4955 = vmatprep.mubr.msk.bf16.mxu0 %vm2806_vm0, %v5416_v17  ;;  %4988 = vmatpush3.bf16.msra.mxu0 %v5420_v32 }
 0x4dd   :  { %4989 = vmatprep.subr.bf16.mxu0 %v5421_v2  ;;  %4977 = vmatprep.subr.bf16.mxu1 %v5442_v25 }
 0x4df   :  { %4978 = vmatpush3.bf16.msra.mxu1 %v5442_v25 }
 0x4e0   :  { %4990 = vmatpush3.bf16.msra.mxu0 %v5421_v2 }
 0x4e1   :  { %4991 = vmatprep.subr.bf16.mxu0 %v5422_v35 }
 0x4e3   :  { %4956 = vmatmul.mubr.msk.bf16.gmra.mrb[132].mxu0 %vm2806_vm0, %v5417_v44 }
 0x4e4   :  { %4959 = vmatprep.mubr.msk.bf16.mxu0 %vm2806_vm0, %v5418_v51  ;;  %4992 = vmatpush3.bf16.msra.mxu0 %v5422_v35 }
 0x4e5   :  { %4993 = vmatprep.subr.bf16.mxu0 %v5423_v6 }
 0x4e8   :  { %4994 = vmatpush3.bf16.msra.mxu0 %v5423_v6 }
 0x4e9   :  { %4995 = vmatprep.subr.bf16.mxu0 %v5424_v61 }
 0x4eb   :  { %4960 = vmatmul.mubr.msk.bf16.gmra.mrb[136].mxu0 %vm2806_vm0, %v5419_v62 }
 0x4ec   :  { %4996 = vmatpush3.bf16.msra.mxu0 %v5424_v61 }
 0x4ed   :  { %4997 = vmatprep.subr.bf16.mxu0 %v5425_v23 }
 0x4f0   :  { %4998 = vmatpush3.bf16.msra.mxu0 %v5425_v23 }
 0x4f1   :  { %4999 = vmatprep.subr.bf16.mxu0 %v5426_v43 }
 0x4f4   :  { %5000 = vmatpush3.bf16.msra.mxu0 %v5426_v43 }
 0x4f5   :  { %5001 = vmatprep.subr.bf16.mxu0 %v5427_v39 }
 0x4f8   :  { %5002 = vmatpush3.bf16.msra.mxu0 %v5427_v39 }
 0x4f9   :  { %5011 = vmatprep.subr.bf16.mxu0 %v5429_v46 }
 0x5ae   :  { %v4953_v8 = vpop.f32.mrb[128].mxu0 }
 0x5af   :  { %v2859_v34 = vpop.f32.mrb[129].mxu0 }
 0x5b0   :  { %v4954_v13 = vpop.f32.mrb[130].mxu0 }
 0x5b1   :  { %v2907_v28 = vpack.c.bf16 %v4954_v13, %v4953_v8  ;;  %v2862_v47 = vpop.f32.mrb[131].mxu0 }
 0x5b2   :  { %v2906_v40 = vpack.c.bf16 %v2862_v47, %v2859_v34 }
 0x5b3   :  { %4979 = vmatprep.mubr.bf16.mxu1 %v2907_v28 }
 0x5b4   :  { %5003 = vmatprep.mubr.bf16.mxu0 %v2906_v40 }
 0x5b5   :  { %5004 = vmatmul.mubr.bf16.vlgmr.msra.gmra.mrb[140].mxu0 %v2907_v28 }
 0x5b6   :  { %5012 = vmatpush3.bf16.msra.mxu0 %v5429_v46  ;;  %v4957_v22 = vpop.f32.mrb[132].mxu0 }
 0x5b7   :  { %5013 = vmatprep.subr.bf16.mxu0 %v5431_v50  ;;  %v2875_v4 = vpop.f32.mrb[133].mxu0 }
 0x5b8   :  { %v4958_v29 = vpop.f32.mrb[134].mxu0 }
 0x5b9   :  { %v2909_v52 = vpack.c.bf16 %v4958_v29, %v4957_v22  ;;  %v2878_v60 = vpop.f32.mrb[135].mxu0  ;;  %v5450_v29 = vld [vmem:[%s6825_s10 + $0x40] sm:$0xff]  }
 0x5ba   :  { %5014 = vmatpush3.bf16.msra.mxu0 %v5431_v50  ;;  %v2908_v7 = vpack.c.bf16 %v2878_v60, %v2875_v4  ;;  %v5446_v60 = vld [vmem:[%s6824_s9 + $0x10] sm:$0xff]  }
 0x5bb   :  { %5015 = vmatprep.subr.bf16.mxu0 %v5433_v30 }
 0x5bc   :  { %5007 = vmatprep.mubr.bf16.mxu0 %v2908_v7  ;;  %4980 = vmatmul.mubr.bf16.vlgmr.msra.gmra.mrb[128].mxu1 %v2908_v7 }
 0x5bd   :  { %5008 = vmatmul.mubr.bf16.gmra.mrb[144].mxu0 %v2909_v52  ;;  %4983 = vmatprep.mubr.bf16.mxu1 %v2909_v52 }
 0x5be   :  { %5016 = vmatpush3.bf16.msra.mxu0 %v5433_v30  ;;  %5027 = vmatprep.mubr.bf16.mxu0 %v2908_v7  ;;  %v4961_v55 = vpop.f32.mrb[136].mxu0  ;;  %v5451_v7 = vld [vmem:[%s6825_s10 + $0x48] sm:$0xff]  }
 0x5bf   :  { %5017 = vmatprep.subr.bf16.mxu0 %v5435_v42  ;;  %v2891_v18 = vpop.f32.mrb[137].mxu0 }
 0x5c0   :  { %v4962_v33 = vpop.f32.mrb[138].mxu0 }
 0x5c1   :  { %v2911_v59 = vpack.c.bf16 %v4962_v33, %v4961_v55  ;;  %v2894_v41 = vpop.f32.mrb[139].mxu0  ;;  %v5447_v55 = vld [vmem:[%s6824_s9 + $0x18] sm:$0xff]   ;;  %v5454_v33 = vld [vmem:[%s6825_s10 + $0x60] sm:$0xff]  }
 0x5c2   :  { %5018 = vmatpush3.bf16.msra.mxu0 %v5435_v42  ;;  %v2910_v9 = vpack.c.bf16 %v2894_v41, %v2891_v18  ;;  %v5452_v42 = vld [vmem:[%s6825_s10 + $0x50] sm:$0xff]   ;;  %v5453_v18 = vld [vmem:[%s6825_s10 + $0x58] sm:$0xff]   ;;  %v5455_v41 = vld [vmem:[%s6825_s10 + $0x68] sm:$0xff]  }
 0x5c3   :  { %5019 = vmatprep.subr.bf16.mxu0 %v5437_v54 }
 0x5c4   :  { %4984 = vmatmul.mubr.bf16.gmra.mrb[132].mxu1 %v2910_v9 }
 0x5c6   :  { %5020 = vmatpush3.bf16.msra.mxu0 %v5437_v54  ;;  %v5448_v54 = vld [vmem:[%s6824_s9 + $0x20] sm:$0xff]  }
 0x5c7   :  { %5021 = vmatprep.subr.bf16.mxu0 %v5439_v53 }
 0x5ca   :  { %5022 = vmatpush3.bf16.msra.mxu0 %v5439_v53  ;;  %v5457_v53 = vld [vmem:[%s6825_s10 + $0x78] sm:$0xff]  }
 0x5cb   :  { %5023 = vmatprep.subr.bf16.mxu0 %v5441_v14 }
 0x5ce   :  { %5024 = vmatpush3.bf16.msra.mxu0 %v5441_v14  ;;  %v5458_v14 = vld [vmem:[%s6825_s10] sm:$0xff]  }
 0x5cf   :  { %5025 = vmatprep.subr.bf16.mxu0 %v5443_v0 }
 0x5d2   :  { %5026 = vmatpush3.bf16.msra.mxu0 %v5443_v0 }
 0x5d5   :  { %5028 = vmatmul.mubr.bf16.vlgmr.msra.gmra.mrb[140].mxu0 %v2909_v52  ;;  %v5445_v52 = vld [vmem:[%s6824_s9 + $0x8] sm:$0xff]  }
 0x5d6   :  { %5031 = vmatprep.mubr.bf16.mxu0 %v2910_v9  ;;  %v5456_v9 = vld [vmem:[%s6825_s10 + $0x70] sm:$0xff]  }
 0x5dd   :  { %5032 = vmatmul.mubr.bf16.gmra.mrb[144].mxu0 %v2911_v59  ;;  %v5449_v59 = vld [vmem:[%s6824_s9 + $0x28] sm:$0xff]  }
 0x5de   :  { %5037 = vmatprep.mubr.msk.bf16.mxu0 %vm3381_vm1, %v5444_v21 }
 0x68f   :  { %v4981_v20 = vpop.f32.mrb[128].mxu1 }
 0x690   :  { %v3027_v31 = vpop.f32.mrb[129].mxu1 }
 0x691   :  { %v4982_v63 = vpop.f32.mrb[130].mxu1 }
 0x692   :  { %v3030_v27 = vpop.f32.mrb[131].mxu1 }
 0x697   :  { %v4985_v58 = vpop.f32.mrb[132].mxu1 }
 0x698   :  { %v3043_v56 = vpop.f32.mrb[133].mxu1 }
 0x699   :  { %v4986_v38 = vpop.f32.mrb[134].mxu1 }
 0x69a   :  { %v3046_v36 = vpop.f32.mrb[135].mxu1 }
 0x6a8   :  { %v5029_v12 = vpop.f32.mrb[140].mxu0 }
 0x6a9   :  { %v5147_v26 = vadd.f32 %v5029_v12, %v4981_v20  ;;  %v3270_v57 = vpop.f32.mrb[141].mxu0 }
 0x6aa   :  { %v5148_v37 = vadd.f32 %v3270_v57, %v3027_v31  ;;  %v5030_v45 = vpop.f32.mrb[142].mxu0  ;;  %v5460_v57 = vld [vmem:[%s6825_s10 + $0x10] sm:$0xff]  }
 0x6ab   :  { %v3318_v5 = vadd.f32 %v5147_v26, %v4331_v15  ;;  %v5149_v16 = vadd.f32 %v5030_v45, %v4982_v63  ;;  %v3273_v32 = vpop.f32.mrb[143].mxu0  ;;  %v5459_v26 = vld [vmem:[%s6825_s10 + $0x8] sm:$0xff]  }
 0x6ac   :  { %v3316_v48 = vadd.f32 %v5148_v37, %v4331_v15  ;;  %v5150_v17 = vadd.f32 %v3273_v32, %v3030_v27 }
 0x6ad   :  { %v3326_v2 = vmax.f32 %v3318_v5, 0.0  ;;  %v3319_v35 = vadd.f32 %v5149_v16, %v4331_v15 }
 0x6ae   :  { %v3324_v44 = vmax.f32 %v3316_v48, 0.0  ;;  %v3317_v51 = vadd.f32 %v5150_v17, %v4331_v15  ;;  %v5461_v48 = vld [vmem:[%s6825_s10 + $0x18] sm:$0xff]  }
 0x6af   :  { %v3327_v6 = vmax.f32 %v3319_v35, 0.0  ;;  %v5463_v35 = vld [vmem:[%s6825_s10 + $0x28] sm:$0xff]  }
 0x6b0   :  { %v3332_v61 = vmax.f32 %v3324_v44, %v3326_v2  ;;  %v3325_v62 = vmax.f32 %v3317_v51, 0.0  ;;  %v5033_v23 = vpop.f32.mrb[144].mxu0  ;;  %v5462_v2 = vld [vmem:[%s6825_s10 + $0x20] sm:$0xff]   ;;  %v5464_v44 = vld [vmem:[%s6825_s10 + $0x30] sm:$0xff]   ;;  %v5465_v51 = vld [vmem:[%s6825_s10 + $0x38] sm:$0xff]  }
 0x6b1   :  { %v5151_v43 = vadd.f32 %v5033_v23, %v4985_v58  ;;  %v3286_v19 = vpop.f32.mrb[145].mxu0  ;;  %v5469_v23 = vld [vmem:[%s6825_s10 + $0x98] sm:$0xff]  }
 0x6b2   :  { %v3333_v1 = vmax.f32 %v3325_v62, %v3327_v6  ;;  %v5152_v10 = vadd.f32 %v3286_v19, %v3043_v56  ;;  %v5034_v39 = vpop.f32.mrb[146].mxu0  ;;  %v5466_v6 = vld [vmem:[%s6825_s10 + $0x80] sm:$0xff]   ;;  %v5468_v62 = vld [vmem:[%s6825_s10 + $0x90] sm:$0xff]   ;;  %v5471_v19 = vld [vmem:[%s6825_s10 + $0xa8] sm:$0xff]  }
 0x6b3   :  { %v3322_v11 = vadd.f32 %v5151_v43, %v4331_v15  ;;  %v5153_v46 = vadd.f32 %v5034_v39, %v4986_v38  ;;  %v3289_v24 = vpop.f32.mrb[147].mxu0  ;;  %v5470_v43 = vld [vmem:[%s6825_s10 + $0xa0] sm:$0xff]   ;;  %v5488_v39 = vmov 0.0  }
 0x6b4   :  { %v3320_v3 = vadd.f32 %v5152_v10, %v4331_v15  ;;  %v5154_v49 = vadd.f32 %v3289_v24, %v3046_v36  ;;  %v5473_v10 = vld [vmem:[%s6825_s10 + $0xb8] sm:$0xff]   ;;  %5127 = vmatprep.subr.bf16.mxu1 %v5488_v39  ;;  %5143 = vmatprep.mubr.msk.bf16.mxu1 %vm5489_vm2, %v5488_v39  ;;  %v5476_v24 = vld [vmem:[%s6827_s13 + $0x10] sm:$0xff]  }
 0x6b5   :  { %v3330_v25 = vmax.f32 %v3322_v11, 0.0  ;;  %v3323_v8 = vadd.f32 %v5153_v46, %v4331_v15  ;;  %v5474_v11 = vld [vmem:[%s6827_s13] sm:$0xff]   ;;  %v5475_v46 = vld [vmem:[%s6827_s13 + $0x8] sm:$0xff]  }
 0x6b6   :  { %v3328_v34 = vmax.f32 %v3320_v3, 0.0  ;;  %v3321_v13 = vadd.f32 %v5154_v49, %v4331_v15  ;;  %5128 = vmatpush3.bf16.msra.mxu1 %v5474_v11  ;;  %v5477_v3 = vld [vmem:[%s6827_s13 + $0x18] sm:$0xff]   ;;  %v5478_v49 = vld [vmem:[%s6827_s13 + $0x20] sm:$0xff]  }
 0x6b7   :  { %v3331_v28 = vmax.f32 %v3323_v8, 0.0  ;;  %5129 = vmatprep.subr.bf16.mxu1 %v5488_v39  ;;  %v5480_v8 = vld [vmem:[%s6827_s13 + $0x30] sm:$0xff]  }
 0x6b8   :  { %v3334_v47 = vmax.f32 %v3328_v34, %v3330_v25  ;;  %v3329_v40 = vmax.f32 %v3321_v13, 0.0  ;;  %v5479_v25 = vld [vmem:[%s6827_s13 + $0x28] sm:$0xff]   ;;  %v4400_v34 = vld [vmem:[%s6828_s11] ss:$0 sm:$0xff] }
 0x6ba   :  { %v3335_v50 = vmax.f32 %v3329_v40, %v3331_v28  ;;  %v3336_v22 = vmax.f32 %v3332_v61, %v3334_v47  ;;  %v5467_v61 = vld [vmem:[%s6825_s10 + $0x88] sm:$0xff]   ;;  %5130 = vmatpush3.bf16.msra.mxu1 %v5475_v46 }
 0x6bb   :  { %5131 = vmatprep.subr.bf16.mxu1 %v5488_v39 }
 0x6bc   :  { %v3337_v30 = vmax.f32 %v3333_v1, %v3335_v50  ;;  %v5472_v1 = vld [vmem:[%s6825_s10 + $0xb0] sm:$0xff]  }
 0x6be   :  { %v3350_v4 = vpack.c.bf16 %v3337_v30, %v3336_v22  ;;  %5132 = vmatpush3.bf16.msra.mxu1 %v5476_v24 }
 0x6bf   :  { %5133 = vmatprep.subr.bf16.mxu1 %v5488_v39 }
 0x6c0   :  { %5035 = vmatprep.subr.bf16.mxu0 %v3350_v4 }
 0x6c1   :  { %5036 = vmatpush3.bf16.msra.mxu0 %v3350_v4 }
 0x6c2   :  { %5049 = vmatprep.subr.bf16.mxu0 %v5450_v29  ;;  %5134 = vmatpush3.bf16.msra.mxu1 %v5477_v3 }
 0x6c3   :  { %5135 = vmatprep.subr.bf16.mxu1 %v5488_v39 }
 0x6c4   :  { %5038 = vmatmul.mubr.msk.bf16.vlgmr.msra.gmra.mrb[148].mxu0 %vm3381_vm1, %v5445_v52 }
 0x6c5   :  { %5041 = vmatprep.mubr.msk.bf16.mxu0 %vm3381_vm1, %v5446_v60  ;;  %5050 = vmatpush3.bf16.msra.mxu0 %v5450_v29 }
 0x6c6   :  { %5051 = vmatprep.subr.bf16.mxu0 %v5451_v7  ;;  %5136 = vmatpush3.bf16.msra.mxu1 %v5478_v49 }
 0x6c7   :  { %5137 = vmatprep.subr.bf16.mxu1 %v5488_v39 }
 0x6c9   :  { %5052 = vmatpush3.bf16.msra.mxu0 %v5451_v7 }
 0x6ca   :  { %5053 = vmatprep.subr.bf16.mxu0 %v5452_v42  ;;  %5138 = vmatpush3.bf16.msra.mxu1 %v5479_v25 }
 0x6cb   :  { %5139 = vmatprep.subr.bf16.mxu1 %v5488_v39 }
 0x6cc   :  { %5042 = vmatmul.mubr.msk.bf16.gmra.mrb[152].mxu0 %vm3381_vm1, %v5447_v55 }
 0x6cd   :  { %5045 = vmatprep.mubr.msk.bf16.mxu0 %vm3381_vm1, %v5448_v54  ;;  %5054 = vmatpush3.bf16.msra.mxu0 %v5452_v42 }
 0x6ce   :  { %5055 = vmatprep.subr.bf16.mxu0 %v5453_v18  ;;  %5140 = vmatpush3.bf16.msra.mxu1 %v5480_v8 }
 0x6cf   :  { %5141 = vmatprep.subr.bf16.mxu1 %v5488_v39 }
 0x6d1   :  { %5056 = vmatpush3.bf16.msra.mxu0 %v5453_v18 }
 0x6d2   :  { %5057 = vmatprep.subr.bf16.mxu0 %v5454_v33 }
 0x6d4   :  { %5046 = vmatmul.mubr.msk.bf16.gmra.mrb[156].mxu0 %vm3381_vm1, %v5449_v59 }
 0x6d5   :  { %5058 = vmatpush3.bf16.msra.mxu0 %v5454_v33 }
 0x6d6   :  { %5059 = vmatprep.subr.bf16.mxu0 %v5455_v41 }
 0x6d9   :  { %5060 = vmatpush3.bf16.msra.mxu0 %v5455_v41 }
 0x6da   :  { %5061 = vmatprep.subr.bf16.mxu0 %v5456_v9 }
 0x6dd   :  { %5062 = vmatpush3.bf16.msra.mxu0 %v5456_v9 }
 0x6de   :  { %5063 = vmatprep.subr.bf16.mxu0 %v5457_v53 }
 0x6e1   :  { %5064 = vmatpush3.bf16.msra.mxu0 %v5457_v53 }
 0x6e2   :  { %5073 = vmatprep.subr.bf16.mxu0 %v5458_v14 }
 0x797   :  { %v5039_v0 = vpop.f32.mrb[148].mxu0 }
 0x798   :  { %v3434_v21 = vpop.f32.mrb[149].mxu0 }
 0x799   :  { %v5040_v20 = vpop.f32.mrb[150].mxu0 }
 0x79a   :  { %v3482_v31 = vpack.c.bf16 %v5040_v20, %v5039_v0  ;;  %v3437_v63 = vpop.f32.mrb[151].mxu0 }
 0x79b   :  { %v3481_v27 = vpack.c.bf16 %v3437_v63, %v3434_v21 }
 0x79c   :  { %5065 = vmatprep.mubr.bf16.mxu0 %v3482_v31 }
 0x79f   :  { %v5043_v58 = vpop.f32.mrb[152].mxu0 }
 0x7a0   :  { %v3450_v56 = vpop.f32.mrb[153].mxu0 }
 0x7a1   :  { %v5044_v38 = vpop.f32.mrb[154].mxu0 }
 0x7a2   :  { %v3484_v36 = vpack.c.bf16 %v5044_v38, %v5043_v58  ;;  %v3453_v12 = vpop.f32.mrb[155].mxu0 }
 0x7a3   :  { %v3483_v15 = vpack.c.bf16 %v3453_v12, %v3450_v56  ;;  %v5481_v12 = vld [vmem:[%s6827_s13 + $0x38] sm:$0xff]  }
 0x7a4   :  { %5142 = vmatpush3.bf16.msra.mxu1 %v5481_v12 }
 0x7a5   :  { %5066 = vmatmul.mubr.bf16.vlgmr.msra.gmra.mrb[160].mxu0 %v3483_v15 }
 0x7a6   :  { %5074 = vmatpush3.bf16.msra.mxu0 %v5458_v14  ;;  %5069 = vmatprep.mubr.bf16.mxu0 %v3484_v36 }
 0x7a7   :  { %5075 = vmatprep.subr.bf16.mxu0 %v5459_v26  ;;  %v5047_v37 = vpop.f32.mrb[156].mxu0 }
 0x7a8   :  { %v3466_v45 = vpop.f32.mrb[157].mxu0 }
 0x7a9   :  { %v5048_v5 = vpop.f32.mrb[158].mxu0 }
 0x7aa   :  { %5076 = vmatpush3.bf16.msra.mxu0 %v5459_v26  ;;  %v3486_v16 = vpack.c.bf16 %v5048_v5, %v5047_v37  ;;  %v3469_v32 = vpop.f32.mrb[159].mxu0  ;;  %v4402_v5 = vld [vmem:[%s6830_s14] ss:$0 sm:$0xff] }
 0x7ab   :  { %5077 = vmatprep.subr.bf16.mxu0 %v5460_v57  ;;  %v3485_v17 = vpack.c.bf16 %v3469_v32, %v3466_v45 }
 0x7ad   :  { %5070 = vmatmul.mubr.bf16.gmra.mrb[164].mxu0 %v3485_v17 }
 0x7ae   :  { %5078 = vmatpush3.bf16.msra.mxu0 %v5460_v57  ;;  %5089 = vmatprep.mubr.bf16.mxu0 %v3481_v27 }
 0x7af   :  { %5079 = vmatprep.subr.bf16.mxu0 %v5461_v48 }
 0x7b2   :  { %5080 = vmatpush3.bf16.msra.mxu0 %v5461_v48 }
 0x7b3   :  { %5081 = vmatprep.subr.bf16.mxu0 %v5462_v2 }
 0x7b6   :  { %5082 = vmatpush3.bf16.msra.mxu0 %v5462_v2 }
 0x7b7   :  { %5083 = vmatprep.subr.bf16.mxu0 %v5463_v35 }
 0x7ba   :  { %5084 = vmatpush3.bf16.msra.mxu0 %v5463_v35 }
 0x7bb   :  { %5085 = vmatprep.subr.bf16.mxu0 %v5464_v44 }
 0x7be   :  { %5086 = vmatpush3.bf16.msra.mxu0 %v5464_v44 }
 0x7bf   :  { %5087 = vmatprep.subr.bf16.mxu0 %v5465_v51 }
 0x7c2   :  { %5088 = vmatpush3.bf16.msra.mxu0 %v5465_v51 }
 0x7c3   :  { %5097 = vmatprep.subr.bf16.mxu0 %v5466_v6 }
 0x7c5   :  { %5090 = vmatmul.mubr.bf16.vlgmr.msra.gmra.mrb[160].mxu0 %v3482_v31 }
 0x7c6   :  { %5098 = vmatpush3.bf16.msra.mxu0 %v5466_v6  ;;  %5093 = vmatprep.mubr.bf16.mxu0 %v3483_v15 }
 0x7c7   :  { %5099 = vmatprep.subr.bf16.mxu0 %v5467_v61 }
 0x7ca   :  { %5100 = vmatpush3.bf16.msra.mxu0 %v5467_v61 }
 0x7cb   :  { %5101 = vmatprep.subr.bf16.mxu0 %v5468_v62 }
 0x7cd   :  { %5094 = vmatmul.mubr.bf16.gmra.mrb[164].mxu0 %v3484_v36 }
 0x7ce   :  { %5102 = vmatpush3.bf16.msra.mxu0 %v5468_v62  ;;  %5113 = vmatprep.mubr.bf16.mxu0 %v3483_v15 }
 0x7cf   :  { %5103 = vmatprep.subr.bf16.mxu0 %v5469_v23 }
 0x7d2   :  { %5104 = vmatpush3.bf16.msra.mxu0 %v5469_v23 }
 0x7d3   :  { %5105 = vmatprep.subr.bf16.mxu0 %v5470_v43 }
 0x7d6   :  { %5106 = vmatpush3.bf16.msra.mxu0 %v5470_v43 }
 0x7d7   :  { %5107 = vmatprep.subr.bf16.mxu0 %v5471_v19 }
 0x7da   :  { %5108 = vmatpush3.bf16.msra.mxu0 %v5471_v19 }
 0x7db   :  { %5109 = vmatprep.subr.bf16.mxu0 %v5472_v1 }
 0x7de   :  { %5110 = vmatpush3.bf16.msra.mxu0 %v5472_v1 }
 0x7df   :  { %5111 = vmatprep.subr.bf16.mxu0 %v5473_v10 }
 0x7e2   :  { %5112 = vmatpush3.bf16.msra.mxu0 %v5473_v10 }
 0x7e3   :  { %5121 = vmatprep.subr.bf16.mxu0 %v5488_v39 }
 0x7e5   :  { %5114 = vmatmul.mubr.bf16.vlgmr.msra.gmra.mrb[160].mxu0 %v3484_v36  ;;  %v3913_v36 = vld [vmem:[%s6829_s12] sm:$0xf] }
 0x7e6   :  { %5117 = vmatprep.mubr.bf16.mxu0 %v3485_v17 }
 0x7ed   :  { %5118 = vmatmul.mubr.bf16.gmra.mrb[164].mxu0 %v3486_v16 }
 0x7ee   :  { %5123 = vmatprep.mubr.msk.bf16.mxu0 %vm5489_vm2, %v5488_v39 }
 0x8b8   :  { %v5115_v13 = vpop.f32.mrb[160].mxu0 }
 0x8b9   :  { %v3893_v28 = vadd.f32 %v5115_v13, %v4400_v34  ;;  %v3845_v47 = vpop.f32.mrb[161].mxu0 }
 0x8ba   :  { %v3891_v40 = vadd.f32 %v4400_v34, %v3845_v47  ;;  %v5116_v50 = vpop.f32.mrb[162].mxu0 }
 0x8bb   :  { %v3901_v22 = vmax.f32 %v3893_v28, 0.0  ;;  %v3894_v30 = vadd.f32 %v5116_v50, %v4400_v34  ;;  %v3848_v4 = vpop.f32.mrb[163].mxu0 }
 0x8bc   :  { %v3899_v29 = vmax.f32 %v3891_v40, 0.0  ;;  %v3892_v52 = vadd.f32 %v4400_v34, %v3848_v4 }
 0x8bd   :  { %v3902_v60 = vmax.f32 %v3894_v30, 0.0 }
 0x8be   :  { %v3907_v7 = vmax.f32 %v3899_v29, %v3901_v22  ;;  %v3900_v42 = vmax.f32 %v3892_v52, 0.0 }
 0x8c0   :  { %v3908_v55 = vmax.f32 %v3900_v42, %v3902_v60  ;;  %v5119_v54 = vpop.f32.mrb[164].mxu0 }
 0x8c1   :  { %v3897_v18 = vadd.f32 %v5119_v54, %v4400_v34  ;;  %v3861_v33 = vpop.f32.mrb[165].mxu0 }
 0x8c2   :  { %v3895_v59 = vadd.f32 %v4400_v34, %v3861_v33  ;;  %v5120_v41 = vpop.f32.mrb[166].mxu0 }
 0x8c3   :  { %v3905_v9 = vmax.f32 %v3897_v18, 0.0  ;;  %v3898_v53 = vadd.f32 %v5120_v41, %v4400_v34  ;;  %v3864_v14 = vpop.f32.mrb[167].mxu0 }
 0x8c4   :  { %v3903_v0 = vmax.f32 %v3895_v59, 0.0  ;;  %v3896_v21 = vadd.f32 %v4400_v34, %v3864_v14 }
 0x8c5   :  { %v3906_v20 = vmax.f32 %v3898_v53, 0.0 }
 0x8c6   :  { %v3909_v31 = vmax.f32 %v3903_v0, %v3905_v9  ;;  %v3904_v63 = vmax.f32 %v3896_v21, 0.0 }
 0x8c8   :  { %v3911_v27 = vmax.f32 %v3907_v7, %v3909_v31  ;;  %v3910_v58 = vmax.f32 %v3904_v63, %v3906_v20 }
 0x8ca   :  { %v3912_v56 = vmax.f32 %v3908_v55, %v3910_v58 }
 0x8cc   :  { %v3914_v38 = vpack.c.bf16 %v3912_v56, %v3911_v27 }
 0x8ce   :  { %5122 = vmatpush3.bf16.msra.mxu0 %v3914_v38 }
 0x8d1   :  { %5124 = vmatmul.mubr.msk.bf16.vlgmr.msra.gmra.mrb[168].mxu0 %vm3381_vm1, %v3913_v36 }
 0x9a4   :  { %v3952_v15 = vpop.f32.mrb[168].mxu0 }
 0x9a5   :  { %v3958_v26 = vpack.c.bf16 %v3952_v15, %v3952_v15  ;;  %v5125_v57 = vpop.f32.mrb[169].mxu0 }
 0x9a6   :  { %v3955_v37 = vpop.f32.mrb[170].mxu0 }
 0x9a7   :  { %5144 = vmatmul.mubr.bf16.vlgmr.msra.gmra.mrb[136].mxu1 %v3958_v26  ;;  %v5126_v45 = vpop.f32.mrb[171].mxu0 }
 0xa7a   :  { %v4064_v16 = vpop.f32.mrb[136].mxu1 }
 0xa7b   :  { %v4065_v32 = vadd.f32 %v4402_v5, %v4064_v16  ;;  %v5145_v48 = vpop.f32.mrb[137].mxu1 }
 0xa7c   :  { %v4067_v17 = vpop.f32.mrb[138].mxu1 }
 0xa7d   :  { %4070 = vmax.xlane.f32.xlu0 %v4065_v32  ;;  %v5146_v2 = vpop.f32.mrb[139].mxu1 }
 0xb0a   :  { %v4071_v35 = vpop.xlane.xlu0 %4070 }
 0xb0b   :  { %v4072_v44 = vsub.f32 %v4065_v32, %v4071_v35 }
 0xb0d   :  { %v4073_v51 = vmul.f32 1.442695, %v4072_v44 }
 0xb0f   :  { %5482 = vpow2.f32 %v4073_v51 }
 0xb19   :  { %v5483_v6 = vpop.eup %5482 }
 0xb1a   :  { %4075 = vadd.xlane.f32.xlu0 %v5483_v6 }
 0xba7   :  { %v4076_v61 = vpop.xlane.xlu0 %4075 }
 0xba8   :  { %5484 = vlog2.f32 %v4076_v61 }
 0xbb2   :  { %v5485_v62 = vpop.eup %5484 }
 0xbb3   :  { %v4078_v23 = vmul.f32 0.6931472, %v5485_v62 }
 0xbb5   :  { %v4079_v43 = vsub.f32 %v4072_v44, %v4078_v23 }
 0xbb7   :  { %4080 = vst [vmem:[%s6831_s15] sm:$0xff] %v4079_v43 }

</bundles_post_ra>
